<compile_context>
chip_gen: v7x
topology: tpu7x:2x2x1
jax: 0.10.0
libtpu: 0.0.40
codegen_flags: <defaults>
</compile_context>

<pallas_src>
import functools
import math

import jax
import jax.numpy as jnp
from jax import lax
from jax.experimental import pallas as pl
from jax.experimental.pallas import tpu as pltpu


# ------------------------------ math helpers --------------------------------

def _layernorm(x, gamma, beta, eps=1e-12):
    mean = jnp.mean(x, axis=-1, keepdims=True)
    var = jnp.mean((x - mean) ** 2, axis=-1, keepdims=True)
    return (x - mean) * lax.rsqrt(var + eps) * gamma + beta


def _gelu_tanh(x):
    # TODO(synk): HF BERT uses the exact erf-based GELU; the tanh approximation
    # is used since erf has no guaranteed Mosaic lowering.
    c = 0.7978845608028654  # sqrt(2/pi)
    return 0.5 * x * (1.0 + jnp.tanh(c * (x + 0.044715 * x * x * x)))


# ------------------------------ fused kernel --------------------------------

def encoder_kernel(x_ref, mask_ref, emb_g_ref, emb_b_ref,
                   wqkv_ref, bqkv_ref, wo_ref, bo_ref,
                   ln1g_ref, ln1b_ref, wi_ref, bi_ref,
                   w2_ref, b2_ref, ln2g_ref, ln2b_ref,
                   out_ref,
                   x2_ref, ctx_ref, *, num_heads):
    """One grid step = one transformer layer applied to one batch block."""
    l = pl.program_id(1)
    n_layers = pl.num_programs(1)
    Bblk, S, H = x_ref.shape
    nh = num_heads
    dH = H // nh
    scale = 1.0 / math.sqrt(dH)
    M = Bblk * S

    # ---- first layer: embedding LayerNorm into the persistent hidden-state
    #      scratch; zero the resident CLS accumulator (out block index is
    #      constant along the layer axis -> accumulator pattern).
    @pl.when(l == 0)
    def _():
        x2_ref[...] = _layernorm(x_ref[...].reshape(M, H),
                                 emb_g_ref[...], emb_b_ref[...])
        out_ref[...] = jnp.zeros_like(out_ref)

    x2 = x2_ref[...]                                       # (M, H) f32 residual

    # ---- fused QKV: one (M,H)@(H,3H) bf16 matmul with f32 accumulation
    qkv = (jnp.dot(x2.astype(jnp.bfloat16), wqkv_ref[0],
                   preferred_element_type=jnp.float32)
           + bqkv_ref[0])                                  # (M, 3H) f32
    qkv3 = qkv.reshape(Bblk, S, 3 * H)

    mask = mask_ref[...]                                   # (Bblk, 1, S) f32

    # ---- per-head attention: only ONE head's (Bblk,S,S) score slab is live
    #      at a time; each head's context is written into its column offset of
    #      the ctx VMEM scratch (no concat-based head split / re-assembly).
    # TODO(synk): for long sequences, additionally tile the KV axis with an
    # online softmax (flash pattern) so the score slab stays O(tq*tk).
    for h in range(nh):
        q_h = qkv3[:, :, h * dH:(h + 1) * dH].astype(jnp.bfloat16)
        k_h = qkv3[:, :, H + h * dH:H + (h + 1) * dH].astype(jnp.bfloat16)
        v_h = qkv3[:, :, 2 * H + h * dH:2 * H + (h + 1) * dH].astype(jnp.bfloat16)

        s = jnp.einsum('bqd,bkd->bqk', q_h, k_h,
                       preferred_element_type=jnp.float32)      # (Bblk, S, S)
        s = s * scale + mask
        s = s - jnp.max(s, axis=-1, keepdims=True)
        p = jnp.exp(s)
        p = p * pl.reciprocal(jnp.sum(p, axis=-1, keepdims=True), approx=True)
        ctx_h = jnp.einsum('bqk,bkd->bqd', p.astype(jnp.bfloat16), v_h,
                           preferred_element_type=jnp.float32)  # (Bblk, S, dH)
        ctx_ref[:, h * dH:(h + 1) * dH] = ctx_h.reshape(M, dH)

    # ---- single output projection (K=H), add & norm
    attn = (jnp.dot(ctx_ref[...].astype(jnp.bfloat16), wo_ref[0],
                    preferred_element_type=jnp.float32) + bo_ref[0])
    h1 = _layernorm(attn + x2, ln1g_ref[0], ln1b_ref[0])

    # ---- GELU FFN, add & norm
    inter = _gelu_tanh(
        jnp.dot(h1.astype(jnp.bfloat16), wi_ref[0],
                preferred_element_type=jnp.float32) + bi_ref[0])
    ffn = (jnp.dot(inter.astype(jnp.bfloat16), w2_ref[0],
                   preferred_element_type=jnp.float32) + b2_ref[0])
    x_new = _layernorm(ffn + h1, ln2g_ref[0], ln2b_ref[0])
    x2_ref[...] = x_new

    # ---- 'last_four_sum': accumulate CLS of the last four layers into the
    #      resident output block (single lane-dense writeback at the end).
    @pl.when(l >= n_layers - 4)
    def _():
        out_ref[...] += x_new.reshape(Bblk, S, H)[:, 0:1, :]


def run_encoder(emb, add_mask, params, num_heads, block_b=1):
    B, S, H = emb.shape
    L = params['wqkv'].shape[0]
    I = params['wi'].shape[-1]
    assert B % block_b == 0 and H % num_heads == 0
    grid = (B // block_b, L)

    act_map = lambda b, l: (b, 0, 0)   # batch-blocked activations / output
    w_map = lambda b, l: (l, 0, 0)     # per-layer weight blocks
    g_map = lambda b, l: (0, 0)        # global (embedding LN) params

    in_specs = [
        pl.BlockSpec((block_b, S, H), act_map),       # embeddings
        pl.BlockSpec((block_b, 1, S), act_map),       # additive attention mask
        pl.BlockSpec((1, H), g_map),                  # emb LN gamma
        pl.BlockSpec((1, H), g_map),                  # emb LN beta
        pl.BlockSpec((1, H, 3 * H), w_map),           # wqkv (bf16)
        pl.BlockSpec((1, 1, 3 * H), w_map),           # bqkv
        pl.BlockSpec((1, H, H), w_map),               # wo (bf16)
        pl.BlockSpec((1, 1, H), w_map),               # bo
        pl.BlockSpec((1, 1, H), w_map),               # ln1 gamma
        pl.BlockSpec((1, 1, H), w_map),               # ln1 beta
        pl.BlockSpec((1, H, I), w_map),               # wi (bf16)
        pl.BlockSpec((1, 1, I), w_map),               # bi
        pl.BlockSpec((1, I, H), w_map),               # w2 (bf16)
        pl.BlockSpec((1, 1, H), w_map),               # b2
        pl.BlockSpec((1, 1, H), w_map),               # ln2 gamma
        pl.BlockSpec((1, 1, H), w_map),               # ln2 beta
    ]
    out_specs = pl.BlockSpec((block_b, 1, H), act_map)

    scratch_shapes = [
        pltpu.VMEM((block_b * S, H), jnp.float32),    # persistent residual x2
        pltpu.VMEM((block_b * S, H), jnp.float32),    # attention context slab
    ]

    # ---- advisory cost estimate + scoped-VMEM sizing -------------------------
    m = B * S
    flops = L * (2 * m * H * 3 * H + 4 * m * S * H + 2 * m * H * H
                 + 4 * m * H * I) + 12 * m * H
    trans = L * (B * num_heads * S * S + m * I)
    w_bytes = sum(int(params[k].size) * jnp.dtype(params[k].dtype).itemsize
                  for k in ('wqkv', 'bqkv', 'wo', 'bo', 'ln1_g', 'ln1_b',
                            'wi', 'bi', 'w2', 'b2', 'ln2_g', 'ln2_b'))
    bytes_acc = (emb.size * 4 + add_mask.size * 4
                 + w_bytes * (B // block_b) + B * H * 4)
    cost = pl.CostEstimate(flops=int(flops), transcendentals=int(trans),
                           bytes_accessed=int(bytes_acc))

    blk_bytes = (block_b * S * H + block_b * S) * 4          # activation blocks
    blk_bytes += 2 * H * 4                                    # emb LN params
    blk_bytes += (3 * H * H + H * H + 2 * H * I) * 2          # bf16 weights/layer
    blk_bytes += (3 * H + 2 * H + I + 4 * H) * 4              # biases + LN/layer
    blk_bytes += block_b * H * 4                              # output block
    scratch_bytes = 2 * block_b * S * H * 4
    interm = (block_b * S * 3 * H + 4 * block_b * S * S
              + 2 * block_b * S * I + 8 * block_b * S * H) * 4
    vmem_limit = int(min(96 << 20,
                         max(16 << 20,
                             2 * blk_bytes + scratch_bytes + interm + (4 << 20))))

    kernel = functools.partial(encoder_kernel, num_heads=num_heads)
    out = pl.pallas_call(
        kernel,
        out_shape=jax.ShapeDtypeStruct((B, 1, H), jnp.float32),
        grid_spec=pltpu.PrefetchScalarGridSpec(
            num_scalar_prefetch=0,
            grid=grid,
            in_specs=in_specs,
            out_specs=out_specs,
            scratch_shapes=scratch_shapes),
        compiler_params=pltpu.CompilerParams(
            dimension_semantics=("parallel", "arbitrary"),
            vmem_limit_bytes=vmem_limit),
        cost_estimate=cost,
    )(emb, add_mask,
      params['emb_ln_g'], params['emb_ln_b'],
      params['wqkv'], params['bqkv'], params['wo'], params['bo'],
      params['ln1_g'], params['ln1_b'], params['wi'], params['bi'],
      params['w2'], params['b2'], params['ln2_g'], params['ln2_b'])
    return out[:, 0, :]


# --------------------------- parameters / model ------------------------------

def init_params(key, cfg):
    H, I, L = cfg['hidden'], cfg['intermediate'], cfg['num_layers']
    keys = jax.random.split(key, 3 + 6 * L)

    def w(k, shape):
        return (0.02 * jax.random.normal(k, shape)).astype(jnp.float32)

    wqkv, wo, wi, w2 = [], [], [], []
    ki = 3
    for _ in range(L):
        wq_ = w(keys[ki + 0], (H, H))
        wk_ = w(keys[ki + 1], (H, H))
        wv_ = w(keys[ki + 2], (H, H))
        wqkv.append(jnp.concatenate([wq_, wk_, wv_], axis=1))   # (H, 3H)
        wo.append(w(keys[ki + 3], (H, H)))
        wi.append(w(keys[ki + 4], (H, I)))
        w2.append(w(keys[ki + 5], (I, H)))
        ki += 6

    bf16 = jnp.bfloat16
    params = {
        'word_emb': w(keys[0], (cfg['vocab'], H)),
        'pos_emb': w(keys[1], (cfg['max_pos'], H)),
        'type_emb': w(keys[2], (cfg['type_vocab'], H)),
        'emb_ln_g': jnp.ones((1, H), jnp.float32),
        'emb_ln_b': jnp.zeros((1, H), jnp.float32),
        # Stacked per-layer weights (leading L axis).  Matmul weights in bf16
        # (MXU path); biases / LayerNorm parameters stay f32.
        'wqkv': jnp.stack(wqkv).astype(bf16),
        'bqkv': jnp.zeros((L, 1, 3 * H), jnp.float32),
        'wo': jnp.stack(wo).astype(bf16),
        'bo': jnp.zeros((L, 1, H), jnp.float32),
        'ln1_g': jnp.ones((L, 1, H), jnp.float32),
        'ln1_b': jnp.zeros((L, 1, H), jnp.float32),
        'wi': jnp.stack(wi).astype(bf16),
        'bi': jnp.zeros((L, 1, I), jnp.float32),
        'w2': jnp.stack(w2).astype(bf16),
        'b2': jnp.zeros((L, 1, H), jnp.float32),
        'ln2_g': jnp.ones((L, 1, H), jnp.float32),
        'ln2_b': jnp.zeros((L, 1, H), jnp.float32),
    }
    return params


def bertology_encoder_forward(params, cfg, input_ids,
                              token_type_ids=None, attention_mask=None,
                              block_b=1):
    B, S = input_ids.shape
    if token_type_ids is None:
        token_type_ids = jnp.zeros((B, S), jnp.int32)
    if attention_mask is None:
        attention_mask = jnp.ones((B, S), jnp.int32)

    # Embedding gathers are glue (data-dependent gather); everything else runs
    # inside the gridded Pallas kernel.
    emb = (jnp.take(params['word_emb'], input_ids, axis=0)
           + params['pos_emb'][None, :S, :]
           + jnp.take(params['type_emb'], token_type_ids, axis=0)
           ).astype(jnp.float32)

    # HF-style additive attention mask: (1 - mask) * -10000, shape (B, 1, S).
    add_mask = ((1.0 - attention_mask.astype(jnp.float32)) * -10000.0)[:, None, :]

    # encoder_dropout: identity in inference/eval mode.
    return run_encoder(emb, add_mask, params, cfg['num_heads'], block_b=block_b)


# --------------------------- pure-JAX reference -------------------------------

def _reference_forward(params, cfg, input_ids, token_type_ids, attention_mask):
    B, S = input_ids.shape
    H, nh, L = cfg['hidden'], cfg['num_heads'], cfg['num_layers']
    dH = H // nh

    def ln(x, g, b, eps=1e-12):
        m = jnp.mean(x, -1, keepdims=True)
        v = jnp.mean((x - m) ** 2, -1, keepdims=True)
        return (x - m) * lax.rsqrt(v + eps) * g + b

    emb = (jnp.take(params['word_emb'], input_ids, axis=0)
           + params['pos_emb'][None, :S, :]
           + jnp.take(params['type_emb'], token_type_ids, axis=0))
    x = ln(emb, params['emb_ln_g'], params['emb_ln_b'])
    add_mask = ((1.0 - attention_mask.astype(jnp.float32))
                * -10000.0)[:, None, None, :]

    cls_list = []
    for l in range(L):
        qkv = x @ params['wqkv'][l].astype(jnp.float32) + params['bqkv'][l]
        q, k, v = qkv[..., :H], qkv[..., H:2 * H], qkv[..., 2 * H:]

        def split(t):
            return t.reshape(B, S, nh, dH).transpose(0, 2, 1, 3)

        s = (jnp.einsum('bhqd,bhkd->bhqk', split(q), split(k)) / math.sqrt(dH)
             + add_mask)
        p = jax.nn.softmax(s, axis=-1)
        ctx = (jnp.einsum('bhqk,bhkd->bhqd', p, split(v))
               .transpose(0, 2, 1, 3).reshape(B, S, H))
        attn = ctx @ params['wo'][l].astype(jnp.float32) + params['bo'][l]
        h1 = ln(attn + x, params['ln1_g'][l], params['ln1_b'][l])
        inter = _gelu_tanh(h1 @ params['wi'][l].astype(jnp.float32)
                           + params['bi'][l])
        ffn = inter @ params['w2'][l].astype(jnp.float32) + params['b2'][l]
        x = ln(ffn + h1, params['ln2_g'][l], params['ln2_b'][l])
        cls_list.append(x[:, 0, :])
    return sum(cls_list[-4:])


# --------------------------------- main --------------------------------------

if __name__ == "__main__":
    cfg = dict(vocab=128, hidden=32, num_layers=4, num_heads=4,
               intermediate=64, max_pos=64, type_vocab=2)

    key = jax.random.PRNGKey(0)
    kp, kids = jax.random.split(key)
    params = init_params(kp, cfg)

    B, S = 2, 8
    input_ids = jax.random.randint(kids, (B, S), 0, cfg['vocab'], dtype=jnp.int32)
    token_type_ids = jnp.zeros((B, S), jnp.int32)
    # second sequence has 2 padding positions to exercise the attention mask
    attention_mask = (jnp.arange(S)[None, :]
                      < jnp.array([[S], [S - 2]])).astype(jnp.int32)

    fwd = jax.jit(lambda p, ids, tt, am:
                  bertology_encoder_forward(p, cfg, ids, tt, am, block_b=1))
    out = fwd(params, input_ids, token_type_ids, attention_mask)
    jax.block_until_ready(out)

    assert out.shape == (B, cfg['hidden'])
    assert bool(jnp.all(jnp.isfinite(out)))

    # Loose-tolerance check against a pure-JAX f32 reference (bf16 matmul
    # inputs + approx reciprocal in the kernel softmax stay well under this).
    with jax.default_matmul_precision('float32'):
        ref = _reference_forward(params, cfg, input_ids,
                                 token_type_ids, attention_mask)
    assert bool(jnp.allclose(out, ref, atol=0.1, rtol=0.1)), \
        "kernel output diverges from pure-JAX reference"

    print("KERNEL_OK")
</pallas_src>

<mosaic_0001>
module attributes {stable_mosaic.version = 11 : i64} {
  func.func @encoder_kernel(%arg0: i32, %arg1: i32, %arg2: memref<1x8x32xf32, #tpu.memory_space<vmem>>, %arg3: memref<1x1x8xf32, #tpu.memory_space<vmem>>, %arg4: memref<1x32xf32, #tpu.memory_space<vmem>>, %arg5: memref<1x32xf32, #tpu.memory_space<vmem>>, %arg6: memref<1x32x96xbf16, #tpu.memory_space<vmem>>, %arg7: memref<1x1x96xf32, #tpu.memory_space<vmem>>, %arg8: memref<1x32x32xbf16, #tpu.memory_space<vmem>>, %arg9: memref<1x1x32xf32, #tpu.memory_space<vmem>>, %arg10: memref<1x1x32xf32, #tpu.memory_space<vmem>>, %arg11: memref<1x1x32xf32, #tpu.memory_space<vmem>>, %arg12: memref<1x32x64xbf16, #tpu.memory_space<vmem>>, %arg13: memref<1x1x64xf32, #tpu.memory_space<vmem>>, %arg14: memref<1x64x32xbf16, #tpu.memory_space<vmem>>, %arg15: memref<1x1x32xf32, #tpu.memory_space<vmem>>, %arg16: memref<1x1x32xf32, #tpu.memory_space<vmem>>, %arg17: memref<1x1x32xf32, #tpu.memory_space<vmem>>, %arg18: memref<1x1x32xf32, #tpu.memory_space<vmem>>, %arg19: memref<8x32xf32, #tpu.memory_space<vmem>>, %arg20: memref<8x32xf32, #tpu.memory_space<vmem>>) attributes {dimension_semantics = [#tpu.dimension_semantics<parallel>, #tpu.dimension_semantics<arbitrary>], iteration_bounds = array<i64: 2, 4>, scalar_prefetch = 0 : i64, scratch_operands = 2 : i64, tpu.core_type = #tpu.core_type<tc>, window_params = [{transform_indices = @transform_0, window_bounds = array<i64: 1, 8, 32>}, {transform_indices = @transform_1, window_bounds = array<i64: 1, 1, 8>}, {pipeline_mode = #tpu.pipeline_mode<synchronous>, transform_indices = @transform_2, window_bounds = array<i64: 1, 32>}, {pipeline_mode = #tpu.pipeline_mode<synchronous>, transform_indices = @transform_3, window_bounds = array<i64: 1, 32>}, {transform_indices = @transform_4, window_bounds = array<i64: 1, 32, 96>}, {transform_indices = @transform_5, window_bounds = array<i64: 1, 1, 96>}, {transform_indices = @transform_6, window_bounds = array<i64: 1, 32, 32>}, {transform_indices = @transform_7, window_bounds = array<i64: 1, 1, 32>}, {transform_indices = @transform_8, window_bounds = array<i64: 1, 1, 32>}, {transform_indices = @transform_9, window_bounds = array<i64: 1, 1, 32>}, {transform_indices = @transform_10, window_bounds = array<i64: 1, 32, 64>}, {transform_indices = @transform_11, window_bounds = array<i64: 1, 1, 64>}, {transform_indices = @transform_12, window_bounds = array<i64: 1, 64, 32>}, {transform_indices = @transform_13, window_bounds = array<i64: 1, 1, 32>}, {transform_indices = @transform_14, window_bounds = array<i64: 1, 1, 32>}, {transform_indices = @transform_15, window_bounds = array<i64: 1, 1, 32>}, {transform_indices = @transform_16, window_bounds = array<i64: 1, 1, 32>}]} {
    %c0_i32 = arith.constant 0 : i32
    %0 = arith.cmpi eq, %arg1, %c0_i32 : i32
    %1 = arith.extui %0 : i1 to i32
    %c0_i32_0 = arith.constant 0 : i32
    %2 = arith.cmpi ne, %1, %c0_i32_0 : i32
    scf.if %2 {
      %c0_89 = arith.constant 0 : index
      %c0_90 = arith.constant 0 : index
      %c0_91 = arith.constant 0 : index
      %210 = vector.load %arg2[%c0_89, %c0_90, %c0_91] : memref<1x8x32xf32, #tpu.memory_space<vmem>>, vector<1x8x32xf32>
      %211 = vector.shape_cast %210 : vector<1x8x32xf32> to vector<8x32xf32>
      %c0_92 = arith.constant 0 : index
      %c0_93 = arith.constant 0 : index
      %212 = vector.load %arg4[%c0_92, %c0_93] : memref<1x32xf32, #tpu.memory_space<vmem>>, vector<1x32xf32>
      %c0_94 = arith.constant 0 : index
      %c0_95 = arith.constant 0 : index
      %213 = vector.load %arg5[%c0_94, %c0_95] : memref<1x32xf32, #tpu.memory_space<vmem>>, vector<1x32xf32>
      %cst_96 = arith.constant dense<0.000000e+00> : vector<8xf32>
      %214 = vector.multi_reduction <add>, %211, %cst_96 [1] : vector<8x32xf32> to vector<8xf32>
      %215 = vector.shape_cast %214 : vector<8xf32> to vector<8x1xf32>
      %cst_97 = arith.constant 3.200000e+01 : f32
      %216 = vector.broadcast %cst_97 : f32 to vector<8x1xf32>
      %217 = arith.divf %215, %216 : vector<8x1xf32>
      %218 = vector.broadcast %217 : vector<8x1xf32> to vector<8x32xf32>
      %219 = arith.subf %211, %218 : vector<8x32xf32>
      %220 = arith.mulf %219, %219 : vector<8x32xf32>
      %cst_98 = arith.constant dense<0.000000e+00> : vector<8xf32>
      %221 = vector.multi_reduction <add>, %220, %cst_98 [1] : vector<8x32xf32> to vector<8xf32>
      %222 = vector.shape_cast %221 : vector<8xf32> to vector<8x1xf32>
      %cst_99 = arith.constant 3.200000e+01 : f32
      %223 = vector.broadcast %cst_99 : f32 to vector<8x1xf32>
      %224 = arith.divf %222, %223 : vector<8x1xf32>
      %225 = vector.broadcast %217 : vector<8x1xf32> to vector<8x32xf32>
      %226 = arith.subf %211, %225 : vector<8x32xf32>
      %cst_100 = arith.constant 9.99999996E-13 : f32
      %227 = vector.broadcast %cst_100 : f32 to vector<8x1xf32>
      %228 = arith.addf %224, %227 : vector<8x1xf32>
      %229 = math.rsqrt %228 : vector<8x1xf32>
      %230 = vector.broadcast %229 : vector<8x1xf32> to vector<8x32xf32>
      %231 = arith.mulf %226, %230 : vector<8x32xf32>
      %232 = vector.broadcast %212 : vector<1x32xf32> to vector<8x32xf32>
      %233 = arith.mulf %231, %232 : vector<8x32xf32>
      %234 = vector.broadcast %213 : vector<1x32xf32> to vector<8x32xf32>
      %235 = arith.addf %233, %234 : vector<8x32xf32>
      %c0_101 = arith.constant 0 : index
      %c0_102 = arith.constant 0 : index
      %236 = vector.load %arg19[%c0_101, %c0_102] : memref<8x32xf32, #tpu.memory_space<vmem>>, vector<8x32xf32>
      tpu.vector_store %arg19[%c0_101, %c0_102], %235 {strides = array<i32>} : memref<8x32xf32, #tpu.memory_space<vmem>>, vector<8x32xf32>,
      %cst_103 = arith.constant 0.000000e+00 : f32
      %237 = vector.broadcast %cst_103 : f32 to vector<1x1x32xf32>
      %c0_104 = arith.constant 0 : index
      %c0_105 = arith.constant 0 : index
      %c0_106 = arith.constant 0 : index
      %238 = vector.load %arg18[%c0_104, %c0_105, %c0_106] : memref<1x1x32xf32, #tpu.memory_space<vmem>>, vector<1x1x32xf32>
      tpu.vector_store %arg18[%c0_104, %c0_105, %c0_106], %237 {strides = array<i32>} : memref<1x1x32xf32, #tpu.memory_space<vmem>>, vector<1x1x32xf32>,
    } else {
    }
    %c0 = arith.constant 0 : index
    %c0_1 = arith.constant 0 : index
    %3 = vector.load %arg19[%c0, %c0_1] : memref<8x32xf32, #tpu.memory_space<vmem>>, vector<8x32xf32>
    %4 = arith.truncf %3 : vector<8x32xf32> to vector<8x32xbf16>
    %c0_2 = arith.constant 0 : index
    %c0_3 = arith.constant 0 : index
    %c0_4 = arith.constant 0 : index
    %5 = vector.load %arg6[%c0_2, %c0_3, %c0_4] : memref<1x32x96xbf16, #tpu.memory_space<vmem>>, vector<1x32x96xbf16>
    %6 = vector.shape_cast %5 : vector<1x32x96xbf16> to vector<32x96xbf16>
    %cst = arith.constant dense<0.000000e+00> : vector<8x96xf32>
    %7 = tpu.matmul %4, %6, %cst {dimension_numbers = #tpu.dot_dimension_numbers<[1], [0], [0], [1], [0, 0, 1, 1], [], []>} : vector<8x32xbf16>, vector<32x96xbf16>, vector<8x96xf32> -> vector<8x96xf32>
    %c0_5 = arith.constant 0 : index
    %c0_6 = arith.constant 0 : index
    %c0_7 = arith.constant 0 : index
    %8 = vector.load %arg7[%c0_5, %c0_6, %c0_7] : memref<1x1x96xf32, #tpu.memory_space<vmem>>, vector<1x1x96xf32>
    %9 = vector.shape_cast %8 : vector<1x1x96xf32> to vector<1x96xf32>
    %10 = vector.broadcast %9 : vector<1x96xf32> to vector<8x96xf32>
    %11 = arith.addf %7, %10 : vector<8x96xf32>
    %12 = vector.shape_cast %11 : vector<8x96xf32> to vector<1x8x96xf32>
    %c0_8 = arith.constant 0 : index
    %c0_9 = arith.constant 0 : index
    %c0_10 = arith.constant 0 : index
    %13 = vector.load %arg3[%c0_8, %c0_9, %c0_10] : memref<1x1x8xf32, #tpu.memory_space<vmem>>, vector<1x1x8xf32>
    %14 = vector.extract_strided_slice %12 {offsets = [0, 0, 0], sizes = [1, 8, 8], strides = [1, 1, 1]} : vector<1x8x96xf32> to vector<1x8x8xf32>
    %15 = arith.truncf %14 : vector<1x8x8xf32> to vector<1x8x8xbf16>
    %16 = vector.extract_strided_slice %12 {offsets = [0, 0, 32], sizes = [1, 8, 8], strides = [1, 1, 1]} : vector<1x8x96xf32> to vector<1x8x8xf32>
    %17 = arith.truncf %16 : vector<1x8x8xf32> to vector<1x8x8xbf16>
    %18 = vector.extract_strided_slice %12 {offsets = [0, 0, 64], sizes = [1, 8, 8], strides = [1, 1, 1]} : vector<1x8x96xf32> to vector<1x8x8xf32>
    %19 = arith.truncf %18 : vector<1x8x8xf32> to vector<1x8x8xbf16>
    "tpu.trace_start"() <{level = 10 : i32, message = "bqd,bkd->bqk"}> : () -> ()
    %cst_11 = arith.constant dense<0.000000e+00> : vector<1x8x8xf32>
    %20 = tpu.matmul %15, %17, %cst_11 {dimension_numbers = #tpu.dot_dimension_numbers<[2], [2], [1], [1], [0, 0, 0, 1, 1, 1], [0], [0]>} : vector<1x8x8xbf16>, vector<1x8x8xbf16>, vector<1x8x8xf32> -> vector<1x8x8xf32>
    "tpu.trace_stop"() : () -> ()
    %cst_12 = arith.constant 0.353553385 : f32
    %21 = vector.broadcast %cst_12 : f32 to vector<1x8x8xf32>
    %22 = arith.mulf %20, %21 : vector<1x8x8xf32>
    %23 = vector.broadcast %13 : vector<1x1x8xf32> to vector<1x8x8xf32>
    %24 = arith.addf %22, %23 : vector<1x8x8xf32>
    %cst_13 = arith.constant dense<0xFF800000> : vector<1x8xf32>
    %25 = vector.multi_reduction <maximumf>, %24, %cst_13 [2] : vector<1x8x8xf32> to vector<1x8xf32>
    %26 = vector.shape_cast %25 : vector<1x8xf32> to vector<1x8x1xf32>
    %27 = vector.broadcast %26 : vector<1x8x1xf32> to vector<1x8x8xf32>
    %28 = arith.subf %24, %27 : vector<1x8x8xf32>
    %29 = math.exp %28 : vector<1x8x8xf32>
    %cst_14 = arith.constant dense<0.000000e+00> : vector<1x8xf32>
    %30 = vector.multi_reduction <add>, %29, %cst_14 [2] : vector<1x8x8xf32> to vector<1x8xf32>
    %31 = vector.shape_cast %30 : vector<1x8xf32> to vector<1x8x1xf32>
    %32 = tpu.reciprocal %31 {approx = true} : vector<1x8x1xf32> -> vector<1x8x1xf32>
    %33 = vector.broadcast %32 : vector<1x8x1xf32> to vector<1x8x8xf32>
    %34 = arith.mulf %29, %33 : vector<1x8x8xf32>
    %35 = arith.truncf %34 : vector<1x8x8xf32> to vector<1x8x8xbf16>
    "tpu.trace_start"() <{level = 10 : i32, message = "bqk,bkd->bqd"}> : () -> ()
    %cst_15 = arith.constant dense<0.000000e+00> : vector<1x8x8xf32>
    %36 = tpu.matmul %35, %19, %cst_15 {dimension_numbers = #tpu.dot_dimension_numbers<[2], [1], [1], [2], [0, 0, 0, 1, 1, 2], [0], [0]>} : vector<1x8x8xbf16>, vector<1x8x8xbf16>, vector<1x8x8xf32> -> vector<1x8x8xf32>
    "tpu.trace_stop"() : () -> ()
    %37 = vector.shape_cast %36 : vector<1x8x8xf32> to vector<8x8xf32>
    %c0_16 = arith.constant 0 : index
    %c0_17 = arith.constant 0 : index
    %38 = vector.load %arg20[%c0_16, %c0_17] : memref<8x32xf32, #tpu.memory_space<vmem>>, vector<8x8xf32>
    tpu.vector_store %arg20[%c0_16, %c0_17], %37 {strides = array<i32>} : memref<8x32xf32, #tpu.memory_space<vmem>>, vector<8x8xf32>,
    %39 = vector.extract_strided_slice %12 {offsets = [0, 0, 8], sizes = [1, 8, 8], strides = [1, 1, 1]} : vector<1x8x96xf32> to vector<1x8x8xf32>
    %40 = arith.truncf %39 : vector<1x8x8xf32> to vector<1x8x8xbf16>
    %41 = vector.extract_strided_slice %12 {offsets = [0, 0, 40], sizes = [1, 8, 8], strides = [1, 1, 1]} : vector<1x8x96xf32> to vector<1x8x8xf32>
    %42 = arith.truncf %41 : vector<1x8x8xf32> to vector<1x8x8xbf16>
    %43 = vector.extract_strided_slice %12 {offsets = [0, 0, 72], sizes = [1, 8, 8], strides = [1, 1, 1]} : vector<1x8x96xf32> to vector<1x8x8xf32>
    %44 = arith.truncf %43 : vector<1x8x8xf32> to vector<1x8x8xbf16>
    "tpu.trace_start"() <{level = 10 : i32, message = "bqd,bkd->bqk"}> : () -> ()
    %cst_18 = arith.constant dense<0.000000e+00> : vector<1x8x8xf32>
    %45 = tpu.matmul %40, %42, %cst_18 {dimension_numbers = #tpu.dot_dimension_numbers<[2], [2], [1], [1], [0, 0, 0, 1, 1, 1], [0], [0]>} : vector<1x8x8xbf16>, vector<1x8x8xbf16>, vector<1x8x8xf32> -> vector<1x8x8xf32>
    "tpu.trace_stop"() : () -> ()
    %cst_19 = arith.constant 0.353553385 : f32
    %46 = vector.broadcast %cst_19 : f32 to vector<1x8x8xf32>
    %47 = arith.mulf %45, %46 : vector<1x8x8xf32>
    %48 = vector.broadcast %13 : vector<1x1x8xf32> to vector<1x8x8xf32>
    %49 = arith.addf %47, %48 : vector<1x8x8xf32>
    %cst_20 = arith.constant dense<0xFF800000> : vector<1x8xf32>
    %50 = vector.multi_reduction <maximumf>, %49, %cst_20 [2] : vector<1x8x8xf32> to vector<1x8xf32>
    %51 = vector.shape_cast %50 : vector<1x8xf32> to vector<1x8x1xf32>
    %52 = vector.broadcast %51 : vector<1x8x1xf32> to vector<1x8x8xf32>
    %53 = arith.subf %49, %52 : vector<1x8x8xf32>
    %54 = math.exp %53 : vector<1x8x8xf32>
    %cst_21 = arith.constant dense<0.000000e+00> : vector<1x8xf32>
    %55 = vector.multi_reduction <add>, %54, %cst_21 [2] : vector<1x8x8xf32> to vector<1x8xf32>
    %56 = vector.shape_cast %55 : vector<1x8xf32> to vector<1x8x1xf32>
    %57 = tpu.reciprocal %56 {approx = true} : vector<1x8x1xf32> -> vector<1x8x1xf32>
    %58 = vector.broadcast %57 : vector<1x8x1xf32> to vector<1x8x8xf32>
    %59 = arith.mulf %54, %58 : vector<1x8x8xf32>
    %60 = arith.truncf %59 : vector<1x8x8xf32> to vector<1x8x8xbf16>
    "tpu.trace_start"() <{level = 10 : i32, message = "bqk,bkd->bqd"}> : () -> ()
    %cst_22 = arith.constant dense<0.000000e+00> : vector<1x8x8xf32>
    %61 = tpu.matmul %60, %44, %cst_22 {dimension_numbers = #tpu.dot_dimension_numbers<[2], [1], [1], [2], [0, 0, 0, 1, 1, 2], [0], [0]>} : vector<1x8x8xbf16>, vector<1x8x8xbf16>, vector<1x8x8xf32> -> vector<1x8x8xf32>
    "tpu.trace_stop"() : () -> ()
    %62 = vector.shape_cast %61 : vector<1x8x8xf32> to vector<8x8xf32>
    %c0_23 = arith.constant 0 : index
    %c8 = arith.constant 8 : index
    %63 = vector.load %arg20[%c0_23, %c8] : memref<8x32xf32, #tpu.memory_space<vmem>>, vector<8x8xf32>
    tpu.vector_store %arg20[%c0_23, %c8], %62 {strides = array<i32>} : memref<8x32xf32, #tpu.memory_space<vmem>>, vector<8x8xf32>,
    %64 = vector.extract_strided_slice %12 {offsets = [0, 0, 16], sizes = [1, 8, 8], strides = [1, 1, 1]} : vector<1x8x96xf32> to vector<1x8x8xf32>
    %65 = arith.truncf %64 : vector<1x8x8xf32> to vector<1x8x8xbf16>
    %66 = vector.extract_strided_slice %12 {offsets = [0, 0, 48], sizes = [1, 8, 8], strides = [1, 1, 1]} : vector<1x8x96xf32> to vector<1x8x8xf32>
    %67 = arith.truncf %66 : vector<1x8x8xf32> to vector<1x8x8xbf16>
    %68 = vector.extract_strided_slice %12 {offsets = [0, 0, 80], sizes = [1, 8, 8], strides = [1, 1, 1]} : vector<1x8x96xf32> to vector<1x8x8xf32>
    %69 = arith.truncf %68 : vector<1x8x8xf32> to vector<1x8x8xbf16>
    "tpu.trace_start"() <{level = 10 : i32, message = "bqd,bkd->bqk"}> : () -> ()
    %cst_24 = arith.constant dense<0.000000e+00> : vector<1x8x8xf32>
    %70 = tpu.matmul %65, %67, %cst_24 {dimension_numbers = #tpu.dot_dimension_numbers<[2], [2], [1], [1], [0, 0, 0, 1, 1, 1], [0], [0]>} : vector<1x8x8xbf16>, vector<1x8x8xbf16>, vector<1x8x8xf32> -> vector<1x8x8xf32>
    "tpu.trace_stop"() : () -> ()
    %cst_25 = arith.constant 0.353553385 : f32
    %71 = vector.broadcast %cst_25 : f32 to vector<1x8x8xf32>
    %72 = arith.mulf %70, %71 : vector<1x8x8xf32>
    %73 = vector.broadcast %13 : vector<1x1x8xf32> to vector<1x8x8xf32>
    %74 = arith.addf %72, %73 : vector<1x8x8xf32>
    %cst_26 = arith.constant dense<0xFF800000> : vector<1x8xf32>
    %75 = vector.multi_reduction <maximumf>, %74, %cst_26 [2] : vector<1x8x8xf32> to vector<1x8xf32>
    %76 = vector.shape_cast %75 : vector<1x8xf32> to vector<1x8x1xf32>
    %77 = vector.broadcast %76 : vector<1x8x1xf32> to vector<1x8x8xf32>
    %78 = arith.subf %74, %77 : vector<1x8x8xf32>
    %79 = math.exp %78 : vector<1x8x8xf32>
    %cst_27 = arith.constant dense<0.000000e+00> : vector<1x8xf32>
    %80 = vector.multi_reduction <add>, %79, %cst_27 [2] : vector<1x8x8xf32> to vector<1x8xf32>
    %81 = vector.shape_cast %80 : vector<1x8xf32> to vector<1x8x1xf32>
    %82 = tpu.reciprocal %81 {approx = true} : vector<1x8x1xf32> -> vector<1x8x1xf32>
    %83 = vector.broadcast %82 : vector<1x8x1xf32> to vector<1x8x8xf32>
    %84 = arith.mulf %79, %83 : vector<1x8x8xf32>
    %85 = arith.truncf %84 : vector<1x8x8xf32> to vector<1x8x8xbf16>
    "tpu.trace_start"() <{level = 10 : i32, message = "bqk,bkd->bqd"}> : () -> ()
    %cst_28 = arith.constant dense<0.000000e+00> : vector<1x8x8xf32>
    %86 = tpu.matmul %85, %69, %cst_28 {dimension_numbers = #tpu.dot_dimension_numbers<[2], [1], [1], [2], [0, 0, 0, 1, 1, 2], [0], [0]>} : vector<1x8x8xbf16>, vector<1x8x8xbf16>, vector<1x8x8xf32> -> vector<1x8x8xf32>
    "tpu.trace_stop"() : () -> ()
    %87 = vector.shape_cast %86 : vector<1x8x8xf32> to vector<8x8xf32>
    %c0_29 = arith.constant 0 : index
    %c16 = arith.constant 16 : index
    %88 = vector.load %arg20[%c0_29, %c16] : memref<8x32xf32, #tpu.memory_space<vmem>>, vector<8x8xf32>
    tpu.vector_store %arg20[%c0_29, %c16], %87 {strides = array<i32>} : memref<8x32xf32, #tpu.memory_space<vmem>>, vector<8x8xf32>,
    %89 = vector.extract_strided_slice %12 {offsets = [0, 0, 24], sizes = [1, 8, 8], strides = [1, 1, 1]} : vector<1x8x96xf32> to vector<1x8x8xf32>
    %90 = arith.truncf %89 : vector<1x8x8xf32> to vector<1x8x8xbf16>
    %91 = vector.extract_strided_slice %12 {offsets = [0, 0, 56], sizes = [1, 8, 8], strides = [1, 1, 1]} : vector<1x8x96xf32> to vector<1x8x8xf32>
    %92 = arith.truncf %91 : vector<1x8x8xf32> to vector<1x8x8xbf16>
    %93 = vector.extract_strided_slice %12 {offsets = [0, 0, 88], sizes = [1, 8, 8], strides = [1, 1, 1]} : vector<1x8x96xf32> to vector<1x8x8xf32>
    %94 = arith.truncf %93 : vector<1x8x8xf32> to vector<1x8x8xbf16>
    "tpu.trace_start"() <{level = 10 : i32, message = "bqd,bkd->bqk"}> : () -> ()
    %cst_30 = arith.constant dense<0.000000e+00> : vector<1x8x8xf32>
    %95 = tpu.matmul %90, %92, %cst_30 {dimension_numbers = #tpu.dot_dimension_numbers<[2], [2], [1], [1], [0, 0, 0, 1, 1, 1], [0], [0]>} : vector<1x8x8xbf16>, vector<1x8x8xbf16>, vector<1x8x8xf32> -> vector<1x8x8xf32>
    "tpu.trace_stop"() : () -> ()
    %cst_31 = arith.constant 0.353553385 : f32
    %96 = vector.broadcast %cst_31 : f32 to vector<1x8x8xf32>
    %97 = arith.mulf %95, %96 : vector<1x8x8xf32>
    %98 = vector.broadcast %13 : vector<1x1x8xf32> to vector<1x8x8xf32>
    %99 = arith.addf %97, %98 : vector<1x8x8xf32>
    %cst_32 = arith.constant dense<0xFF800000> : vector<1x8xf32>
    %100 = vector.multi_reduction <maximumf>, %99, %cst_32 [2] : vector<1x8x8xf32> to vector<1x8xf32>
    %101 = vector.shape_cast %100 : vector<1x8xf32> to vector<1x8x1xf32>
    %102 = vector.broadcast %101 : vector<1x8x1xf32> to vector<1x8x8xf32>
    %103 = arith.subf %99, %102 : vector<1x8x8xf32>
    %104 = math.exp %103 : vector<1x8x8xf32>
    %cst_33 = arith.constant dense<0.000000e+00> : vector<1x8xf32>
    %105 = vector.multi_reduction <add>, %104, %cst_33 [2] : vector<1x8x8xf32> to vector<1x8xf32>
    %106 = vector.shape_cast %105 : vector<1x8xf32> to vector<1x8x1xf32>
    %107 = tpu.reciprocal %106 {approx = true} : vector<1x8x1xf32> -> vector<1x8x1xf32>
    %108 = vector.broadcast %107 : vector<1x8x1xf32> to vector<1x8x8xf32>
    %109 = arith.mulf %104, %108 : vector<1x8x8xf32>
    %110 = arith.truncf %109 : vector<1x8x8xf32> to vector<1x8x8xbf16>
    "tpu.trace_start"() <{level = 10 : i32, message = "bqk,bkd->bqd"}> : () -> ()
    %cst_34 = arith.constant dense<0.000000e+00> : vector<1x8x8xf32>
    %111 = tpu.matmul %110, %94, %cst_34 {dimension_numbers = #tpu.dot_dimension_numbers<[2], [1], [1], [2], [0, 0, 0, 1, 1, 2], [0], [0]>} : vector<1x8x8xbf16>, vector<1x8x8xbf16>, vector<1x8x8xf32> -> vector<1x8x8xf32>
    "tpu.trace_stop"() : () -> ()
    %112 = vector.shape_cast %111 : vector<1x8x8xf32> to vector<8x8xf32>
    %c0_35 = arith.constant 0 : index
    %c24 = arith.constant 24 : index
    %113 = vector.load %arg20[%c0_35, %c24] : memref<8x32xf32, #tpu.memory_space<vmem>>, vector<8x8xf32>
    tpu.vector_store %arg20[%c0_35, %c24], %112 {strides = array<i32>} : memref<8x32xf32, #tpu.memory_space<vmem>>, vector<8x8xf32>,
    %c0_36 = arith.constant 0 : index
    %c0_37 = arith.constant 0 : index
    %114 = vector.load %arg20[%c0_36, %c0_37] : memref<8x32xf32, #tpu.memory_space<vmem>>, vector<8x32xf32>
    %115 = arith.truncf %114 : vector<8x32xf32> to vector<8x32xbf16>
    %c0_38 = arith.constant 0 : index
    %c0_39 = arith.constant 0 : index
    %c0_40 = arith.constant 0 : index
    %116 = vector.load %arg8[%c0_38, %c0_39, %c0_40] : memref<1x32x32xbf16, #tpu.memory_space<vmem>>, vector<1x32x32xbf16>
    %117 = vector.shape_cast %116 : vector<1x32x32xbf16> to vector<32x32xbf16>
    %cst_41 = arith.constant dense<0.000000e+00> : vector<8x32xf32>
    %118 = tpu.matmul %115, %117, %cst_41 {dimension_numbers = #tpu.dot_dimension_numbers<[1], [0], [0], [1], [0, 0, 1, 1], [], []>} : vector<8x32xbf16>, vector<32x32xbf16>, vector<8x32xf32> -> vector<8x32xf32>
    %c0_42 = arith.constant 0 : index
    %c0_43 = arith.constant 0 : index
    %c0_44 = arith.constant 0 : index
    %119 = vector.load %arg9[%c0_42, %c0_43, %c0_44] : memref<1x1x32xf32, #tpu.memory_space<vmem>>, vector<1x1x32xf32>
    %120 = vector.shape_cast %119 : vector<1x1x32xf32> to vector<1x32xf32>
    %121 = vector.broadcast %120 : vector<1x32xf32> to vector<8x32xf32>
    %122 = arith.addf %118, %121 : vector<8x32xf32>
    %123 = arith.addf %122, %3 : vector<8x32xf32>
    %c0_45 = arith.constant 0 : index
    %c0_46 = arith.constant 0 : index
    %c0_47 = arith.constant 0 : index
    %124 = vector.load %arg10[%c0_45, %c0_46, %c0_47] : memref<1x1x32xf32, #tpu.memory_space<vmem>>, vector<1x1x32xf32>
    %125 = vector.shape_cast %124 : vector<1x1x32xf32> to vector<1x32xf32>
    %c0_48 = arith.constant 0 : index
    %c0_49 = arith.constant 0 : index
    %c0_50 = arith.constant 0 : index
    %126 = vector.load %arg11[%c0_48, %c0_49, %c0_50] : memref<1x1x32xf32, #tpu.memory_space<vmem>>, vector<1x1x32xf32>
    %127 = vector.shape_cast %126 : vector<1x1x32xf32> to vector<1x32xf32>
    %cst_51 = arith.constant dense<0.000000e+00> : vector<8xf32>
    %128 = vector.multi_reduction <add>, %123, %cst_51 [1] : vector<8x32xf32> to vector<8xf32>
    %129 = vector.shape_cast %128 : vector<8xf32> to vector<8x1xf32>
    %cst_52 = arith.constant 3.200000e+01 : f32
    %130 = vector.broadcast %cst_52 : f32 to vector<8x1xf32>
    %131 = arith.divf %129, %130 : vector<8x1xf32>
    %132 = vector.broadcast %131 : vector<8x1xf32> to vector<8x32xf32>
    %133 = arith.subf %123, %132 : vector<8x32xf32>
    %134 = arith.mulf %133, %133 : vector<8x32xf32>
    %cst_53 = arith.constant dense<0.000000e+00> : vector<8xf32>
    %135 = vector.multi_reduction <add>, %134, %cst_53 [1] : vector<8x32xf32> to vector<8xf32>
    %136 = vector.shape_cast %135 : vector<8xf32> to vector<8x1xf32>
    %cst_54 = arith.constant 3.200000e+01 : f32
    %137 = vector.broadcast %cst_54 : f32 to vector<8x1xf32>
    %138 = arith.divf %136, %137 : vector<8x1xf32>
    %139 = vector.broadcast %131 : vector<8x1xf32> to vector<8x32xf32>
    %140 = arith.subf %123, %139 : vector<8x32xf32>
    %cst_55 = arith.constant 9.99999996E-13 : f32
    %141 = vector.broadcast %cst_55 : f32 to vector<8x1xf32>
    %142 = arith.addf %138, %141 : vector<8x1xf32>
    %143 = math.rsqrt %142 : vector<8x1xf32>
    %144 = vector.broadcast %143 : vector<8x1xf32> to vector<8x32xf32>
    %145 = arith.mulf %140, %144 : vector<8x32xf32>
    %146 = vector.broadcast %125 : vector<1x32xf32> to vector<8x32xf32>
    %147 = arith.mulf %145, %146 : vector<8x32xf32>
    %148 = vector.broadcast %127 : vector<1x32xf32> to vector<8x32xf32>
    %149 = arith.addf %147, %148 : vector<8x32xf32>
    %150 = arith.truncf %149 : vector<8x32xf32> to vector<8x32xbf16>
    %c0_56 = arith.constant 0 : index
    %c0_57 = arith.constant 0 : index
    %c0_58 = arith.constant 0 : index
    %151 = vector.load %arg12[%c0_56, %c0_57, %c0_58] : memref<1x32x64xbf16, #tpu.memory_space<vmem>>, vector<1x32x64xbf16>
    %152 = vector.shape_cast %151 : vector<1x32x64xbf16> to vector<32x64xbf16>
    %cst_59 = arith.constant dense<0.000000e+00> : vector<8x64xf32>
    %153 = tpu.matmul %150, %152, %cst_59 {dimension_numbers = #tpu.dot_dimension_numbers<[1], [0], [0], [1], [0, 0, 1, 1], [], []>} : vector<8x32xbf16>, vector<32x64xbf16>, vector<8x64xf32> -> vector<8x64xf32>
    %c0_60 = arith.constant 0 : index
    %c0_61 = arith.constant 0 : index
    %c0_62 = arith.constant 0 : index
    %154 = vector.load %arg13[%c0_60, %c0_61, %c0_62] : memref<1x1x64xf32, #tpu.memory_space<vmem>>, vector<1x1x64xf32>
    %155 = vector.shape_cast %154 : vector<1x1x64xf32> to vector<1x64xf32>
    %156 = vector.broadcast %155 : vector<1x64xf32> to vector<8x64xf32>
    %157 = arith.addf %153, %156 : vector<8x64xf32>
    %cst_63 = arith.constant 5.000000e-01 : f32
    %158 = vector.broadcast %cst_63 : f32 to vector<8x64xf32>
    %159 = arith.mulf %158, %157 : vector<8x64xf32>
    %cst_64 = arith.constant 4.471500e-02 : f32
    %160 = vector.broadcast %cst_64 : f32 to vector<8x64xf32>
    %161 = arith.mulf %160, %157 : vector<8x64xf32>
    %162 = arith.mulf %161, %157 : vector<8x64xf32>
    %163 = arith.mulf %162, %157 : vector<8x64xf32>
    %164 = arith.addf %157, %163 : vector<8x64xf32>
    %cst_65 = arith.constant 0.797884583 : f32
    %165 = vector.broadcast %cst_65 : f32 to vector<8x64xf32>
    %166 = arith.mulf %165, %164 : vector<8x64xf32>
    %167 = math.tanh %166 : vector<8x64xf32>
    %cst_66 = arith.constant 1.000000e+00 : f32
    %168 = vector.broadcast %cst_66 : f32 to vector<8x64xf32>
    %169 = arith.addf %168, %167 : vector<8x64xf32>
    %170 = arith.mulf %159, %169 : vector<8x64xf32>
    %171 = arith.truncf %170 : vector<8x64xf32> to vector<8x64xbf16>
    %c0_67 = arith.constant 0 : index
    %c0_68 = arith.constant 0 : index
    %c0_69 = arith.constant 0 : index
    %172 = vector.load %arg14[%c0_67, %c0_68, %c0_69] : memref<1x64x32xbf16, #tpu.memory_space<vmem>>, vector<1x64x32xbf16>
    %173 = vector.shape_cast %172 : vector<1x64x32xbf16> to vector<64x32xbf16>
    %cst_70 = arith.constant dense<0.000000e+00> : vector<8x32xf32>
    %174 = tpu.matmul %171, %173, %cst_70 {dimension_numbers = #tpu.dot_dimension_numbers<[1], [0], [0], [1], [0, 0, 1, 1], [], []>} : vector<8x64xbf16>, vector<64x32xbf16>, vector<8x32xf32> -> vector<8x32xf32>
    %c0_71 = arith.constant 0 : index
    %c0_72 = arith.constant 0 : index
    %c0_73 = arith.constant 0 : index
    %175 = vector.load %arg15[%c0_71, %c0_72, %c0_73] : memref<1x1x32xf32, #tpu.memory_space<vmem>>, vector<1x1x32xf32>
    %176 = vector.shape_cast %175 : vector<1x1x32xf32> to vector<1x32xf32>
    %177 = vector.broadcast %176 : vector<1x32xf32> to vector<8x32xf32>
    %178 = arith.addf %174, %177 : vector<8x32xf32>
    %179 = arith.addf %178, %149 : vector<8x32xf32>
    %c0_74 = arith.constant 0 : index
    %c0_75 = arith.constant 0 : index
    %c0_76 = arith.constant 0 : index
    %180 = vector.load %arg16[%c0_74, %c0_75, %c0_76] : memref<1x1x32xf32, #tpu.memory_space<vmem>>, vector<1x1x32xf32>
    %181 = vector.shape_cast %180 : vector<1x1x32xf32> to vector<1x32xf32>
    %c0_77 = arith.constant 0 : index
    %c0_78 = arith.constant 0 : index
    %c0_79 = arith.constant 0 : index
    %182 = vector.load %arg17[%c0_77, %c0_78, %c0_79] : memref<1x1x32xf32, #tpu.memory_space<vmem>>, vector<1x1x32xf32>
    %183 = vector.shape_cast %182 : vector<1x1x32xf32> to vector<1x32xf32>
    %cst_80 = arith.constant dense<0.000000e+00> : vector<8xf32>
    %184 = vector.multi_reduction <add>, %179, %cst_80 [1] : vector<8x32xf32> to vector<8xf32>
    %185 = vector.shape_cast %184 : vector<8xf32> to vector<8x1xf32>
    %cst_81 = arith.constant 3.200000e+01 : f32
    %186 = vector.broadcast %cst_81 : f32 to vector<8x1xf32>
    %187 = arith.divf %185, %186 : vector<8x1xf32>
    %188 = vector.broadcast %187 : vector<8x1xf32> to vector<8x32xf32>
    %189 = arith.subf %179, %188 : vector<8x32xf32>
    %190 = arith.mulf %189, %189 : vector<8x32xf32>
    %cst_82 = arith.constant dense<0.000000e+00> : vector<8xf32>
    %191 = vector.multi_reduction <add>, %190, %cst_82 [1] : vector<8x32xf32> to vector<8xf32>
    %192 = vector.shape_cast %191 : vector<8xf32> to vector<8x1xf32>
    %cst_83 = arith.constant 3.200000e+01 : f32
    %193 = vector.broadcast %cst_83 : f32 to vector<8x1xf32>
    %194 = arith.divf %192, %193 : vector<8x1xf32>
    %195 = vector.broadcast %187 : vector<8x1xf32> to vector<8x32xf32>
    %196 = arith.subf %179, %195 : vector<8x32xf32>
    %cst_84 = arith.constant 9.99999996E-13 : f32
    %197 = vector.broadcast %cst_84 : f32 to vector<8x1xf32>
    %198 = arith.addf %194, %197 : vector<8x1xf32>
    %199 = math.rsqrt %198 : vector<8x1xf32>
    %200 = vector.broadcast %199 : vector<8x1xf32> to vector<8x32xf32>
    %201 = arith.mulf %196, %200 : vector<8x32xf32>
    %202 = vector.broadcast %181 : vector<1x32xf32> to vector<8x32xf32>
    %203 = arith.mulf %201, %202 : vector<8x32xf32>
    %204 = vector.broadcast %183 : vector<1x32xf32> to vector<8x32xf32>
    %205 = arith.addf %203, %204 : vector<8x32xf32>
    %c0_85 = arith.constant 0 : index
    %c0_86 = arith.constant 0 : index
    %206 = vector.load %arg19[%c0_85, %c0_86] : memref<8x32xf32, #tpu.memory_space<vmem>>, vector<8x32xf32>
    tpu.vector_store %arg19[%c0_85, %c0_86], %205 {strides = array<i32>} : memref<8x32xf32, #tpu.memory_space<vmem>>, vector<8x32xf32>,
    %c0_i32_87 = arith.constant 0 : i32
    %207 = arith.cmpi sge, %arg1, %c0_i32_87 : i32
    %208 = arith.extui %207 : i1 to i32
    %c0_i32_88 = arith.constant 0 : i32
    %209 = arith.cmpi ne, %208, %c0_i32_88 : i32
    scf.if %209 {
      %c0_89 = arith.constant 0 : index
      %c0_90 = arith.constant 0 : index
      %c0_91 = arith.constant 0 : index
      %210 = vector.load %arg18[%c0_89, %c0_90, %c0_91] : memref<1x1x32xf32, #tpu.memory_space<vmem>>, vector<1x1x32xf32>
      %211 = vector.shape_cast %205 : vector<8x32xf32> to vector<1x8x32xf32>
      %212 = vector.extract_strided_slice %211 {offsets = [0, 0, 0], sizes = [1, 1, 32], strides = [1, 1, 1]} : vector<1x8x32xf32> to vector<1x1x32xf32>
      %213 = arith.addf %210, %212 : vector<1x1x32xf32>
      %c0_92 = arith.constant 0 : index
      %c0_93 = arith.constant 0 : index
      %c0_94 = arith.constant 0 : index
      %214 = vector.load %arg18[%c0_92, %c0_93, %c0_94] : memref<1x1x32xf32, #tpu.memory_space<vmem>>, vector<1x1x32xf32>
      tpu.vector_store %arg18[%c0_92, %c0_93, %c0_94], %213 {strides = array<i32>} : memref<1x1x32xf32, #tpu.memory_space<vmem>>, vector<1x1x32xf32>,
    } else {
    }
    return
  }
  func.func @transform_0(%arg0: i32, %arg1: i32) -> (i32, i32, i32) {
    %c0_i32 = arith.constant 0 : i32
    %c0_i32_0 = arith.constant 0 : i32
    %c0_i32_1 = arith.constant 0 : i32
    return %arg0, %c0_i32, %c0_i32_0 : i32, i32, i32
  }
  func.func @transform_1(%arg0: i32, %arg1: i32) -> (i32, i32, i32) {
    %c0_i32 = arith.constant 0 : i32
    %c0_i32_0 = arith.constant 0 : i32
    %c0_i32_1 = arith.constant 0 : i32
    return %arg0, %c0_i32, %c0_i32_0 : i32, i32, i32
  }
  func.func @transform_2(%arg0: i32, %arg1: i32) -> (i32, i32) {
    %c0_i32 = arith.constant 0 : i32
    %c0_i32_0 = arith.constant 0 : i32
    %c0_i32_1 = arith.constant 0 : i32
    return %c0_i32, %c0_i32_0 : i32, i32
  }
  func.func @transform_3(%arg0: i32, %arg1: i32) -> (i32, i32) {
    %c0_i32 = arith.constant 0 : i32
    %c0_i32_0 = arith.constant 0 : i32
    %c0_i32_1 = arith.constant 0 : i32
    return %c0_i32, %c0_i32_0 : i32, i32
  }
  func.func @transform_4(%arg0: i32, %arg1: i32) -> (i32, i32, i32) {
    %c0_i32 = arith.constant 0 : i32
    %c0_i32_0 = arith.constant 0 : i32
    %c0_i32_1 = arith.constant 0 : i32
    return %arg1, %c0_i32, %c0_i32_0 : i32, i32, i32
  }
  func.func @transform_5(%arg0: i32, %arg1: i32) -> (i32, i32, i32) {
    %c0_i32 = arith.constant 0 : i32
    %c0_i32_0 = arith.constant 0 : i32
    %c0_i32_1 = arith.constant 0 : i32
    return %arg1, %c0_i32, %c0_i32_0 : i32, i32, i32
  }
  func.func @transform_6(%arg0: i32, %arg1: i32) -> (i32, i32, i32) {
    %c0_i32 = arith.constant 0 : i32
    %c0_i32_0 = arith.constant 0 : i32
    %c0_i32_1 = arith.constant 0 : i32
    return %arg1, %c0_i32, %c0_i32_0 : i32, i32, i32
  }
  func.func @transform_7(%arg0: i32, %arg1: i32) -> (i32, i32, i32) {
    %c0_i32 = arith.constant 0 : i32
    %c0_i32_0 = arith.constant 0 : i32
    %c0_i32_1 = arith.constant 0 : i32
    return %arg1, %c0_i32, %c0_i32_0 : i32, i32, i32
  }
  func.func @transform_8(%arg0: i32, %arg1: i32) -> (i32, i32, i32) {
    %c0_i32 = arith.constant 0 : i32
    %c0_i32_0 = arith.constant 0 : i32
    %c0_i32_1 = arith.constant 0 : i32
    return %arg1, %c0_i32, %c0_i32_0 : i32, i32, i32
  }
  func.func @transform_9(%arg0: i32, %arg1: i32) -> (i32, i32, i32) {
    %c0_i32 = arith.constant 0 : i32
    %c0_i32_0 = arith.constant 0 : i32
    %c0_i32_1 = arith.constant 0 : i32
    return %arg1, %c0_i32, %c0_i32_0 : i32, i32, i32
  }
  func.func @transform_10(%arg0: i32, %arg1: i32) -> (i32, i32, i32) {
    %c0_i32 = arith.constant 0 : i32
    %c0_i32_0 = arith.constant 0 : i32
    %c0_i32_1 = arith.constant 0 : i32
    return %arg1, %c0_i32, %c0_i32_0 : i32, i32, i32
  }
  func.func @transform_11(%arg0: i32, %arg1: i32) -> (i32, i32, i32) {
    %c0_i32 = arith.constant 0 : i32
    %c0_i32_0 = arith.constant 0 : i32
    %c0_i32_1 = arith.constant 0 : i32
    return %arg1, %c0_i32, %c0_i32_0 : i32, i32, i32
  }
  func.func @transform_12(%arg0: i32, %arg1: i32) -> (i32, i32, i32) {
    %c0_i32 = arith.constant 0 : i32
    %c0_i32_0 = arith.constant 0 : i32
    %c0_i32_1 = arith.constant 0 : i32
    return %arg1, %c0_i32, %c0_i32_0 : i32, i32, i32
  }
  func.func @transform_13(%arg0: i32, %arg1: i32) -> (i32, i32, i32) {
    %c0_i32 = arith.constant 0 : i32
    %c0_i32_0 = arith.constant 0 : i32
    %c0_i32_1 = arith.constant 0 : i32
    return %arg1, %c0_i32, %c0_i32_0 : i32, i32, i32
  }
  func.func @transform_14(%arg0: i32, %arg1: i32) -> (i32, i32, i32) {
    %c0_i32 = arith.constant 0 : i32
    %c0_i32_0 = arith.constant 0 : i32
    %c0_i32_1 = arith.constant 0 : i32
    return %arg1, %c0_i32, %c0_i32_0 : i32, i32, i32
  }
  func.func @transform_15(%arg0: i32, %arg1: i32) -> (i32, i32, i32) {
    %c0_i32 = arith.constant 0 : i32
    %c0_i32_0 = arith.constant 0 : i32
    %c0_i32_1 = arith.constant 0 : i32
    return %arg1, %c0_i32, %c0_i32_0 : i32, i32, i32
  }
  func.func @transform_16(%arg0: i32, %arg1: i32) -> (i32, i32, i32) {
    %c0_i32 = arith.constant 0 : i32
    %c0_i32_0 = arith.constant 0 : i32
    %c0_i32_1 = arith.constant 0 : i32
    return %arg0, %c0_i32, %c0_i32_0 : i32, i32, i32
  }
}

</mosaic_0001>

<bundles_post_ra>
// kernel: _lambda_.1
= control target key start
LH: loop header
LB: loop body
LE: loop exit
PB: predicated region body
PF: predicated region fallthrough
CT: control target
= control target key end

     0   :  { %s2677_s0 = inlined_call_operand.vmem [shape: f32[2,8,32], index: 0, kind: input, shape index: {}]   ;;  %s2678_s1 = inlined_call_operand.vmem [shape: f32[2,1,8], index: 1, kind: input, shape index: {}]   ;;  %s2679_s2 = inlined_call_operand.vmem [shape: f32[1,32], index: 2, kind: input, shape index: {}]   ;;  %s2680_s3 = inlined_call_operand.vmem [shape: f32[1,32], index: 3, kind: input, shape index: {}]   ;;  %s2681_s4 = inlined_call_operand.vmem [shape: bf16[4,32,96], index: 4, kind: input, shape index: {}]   ;;  %s2682_s5 = inlined_call_operand.vmem [shape: f32[4,1,96], index: 5, kind: input, shape index: {}]   ;;  %s2683_s6 = inlined_call_operand.vmem [shape: bf16[4,32,32], index: 6, kind: input, shape index: {}]   ;;  %s2684_s7 = inlined_call_operand.vmem [shape: f32[4,1,32], index: 7, kind: input, shape index: {}]   ;;  %s2685_s8 = inlined_call_operand.vmem [shape: f32[4,1,32], index: 8, kind: input, shape index: {}]   ;;  %s2686_s9 = inlined_call_operand.vmem [shape: f32[4,1,32], index: 9, kind: input, shape index: {}]   ;;  %s2687_s10 = inlined_call_operand.vmem [shape: bf16[4,32,64], index: 10, kind: input, shape index: {}]   ;;  %s2688_s11 = inlined_call_operand.vmem [shape: f32[4,1,64], index: 11, kind: input, shape index: {}]   ;;  %s2689_s12 = inlined_call_operand.vmem [shape: bf16[4,64,32], index: 12, kind: input, shape index: {}]   ;;  %s2690_s13 = inlined_call_operand.vmem [shape: f32[4,1,32], index: 13, kind: input, shape index: {}]   ;;  %s2691_s14 = inlined_call_operand.vmem [shape: f32[4,1,32], index: 14, kind: input, shape index: {}]   ;;  %s2692_s15 = inlined_call_operand.vmem [shape: f32[4,1,32], index: 15, kind: input, shape index: {}]   ;;  %s2693_s16 = inlined_call_operand.hbm [shape: f32[2,1,32], index: 16, kind: output, shape index: {}]  }
   0x1   :  { %2707 = sst [smem:[#allocation19_spill]] %s2677_s0 }
   0x2   :  { %2708 = sst [smem:[#allocation20_spill]] %s2678_s1 }
   0x3   :  { %2709 = sst [smem:[#allocation21_spill]] %s2679_s2 }
   0x4   :  { %2710 = sst [smem:[#allocation22_spill]] %s2680_s3 }
   0x5   :  { %2711 = sst [smem:[#allocation23_spill]] %s2681_s4 }
   0x6   :  { %2712 = sst [smem:[#allocation24_spill]] %s2683_s6 }
   0x7   :  { %2713 = sst [smem:[#allocation25_spill]] %s2686_s9 }
   0x8   :  { %2714 = sst [smem:[#allocation26_spill]] %s2687_s10 }
   0x9   :  { %2715 = sst [smem:[#allocation27_spill]] %s2691_s14 }
   0xa   :  { %2716 = sst [smem:[#allocation28_spill]] %s2692_s15 }
   0xb   :  { %2717 = sst [smem:[#allocation29_spill]] %s2693_s16 }
   0xc   :  { %21 = vsyncpa [#allocation5], 0 }
   0xd   :  { %23 = vsyncpa [#allocation5 + $0x1], 0  ;;  %s2316_s21 = smov 0   ;;  %s2318_s22 = smov 0  }
   0xe   :  { %s2320_s23 = smov 0   ;;  %s2322_s24 = smov 0  }
   0xf   :  { %s2324_s25 = smov 0   ;;  %s2326_s26 = smov 0  }
  0x10   :  { %s2328_s27 = smov 0   ;;  %s2330_s28 = smov 0  }
  0x11 LB: > { %2718 = sst [smem:[#allocation7_spill]] %s2183_s21  ;;  %s1825_s29 = sadd.s32 4294967295, %s2211_s28   ;;  %s2211_s28 = sphi %s2330_s28, %s29_s28   ;;  %s2207_s27 = sphi %s2328_s27, %s2767_s27   ;;  %s2203_s26 = sphi %s2326_s26, %s2766_s26   ;;  %s2199_s25 = sphi %s2324_s25, %s2765_s25   ;;  %s2195_s24 = sphi %s2322_s24, %s2764_s24   ;;  %s2191_s23 = sphi %s2320_s23, %s2763_s23   ;;  %s2187_s22 = sphi %s2318_s22, %s2769_s22   ;;  %s2183_s21 = sphi %s2316_s21, %s2768_s21  }
  0x12   : > { %2719 = sst [smem:[#allocation8_spill]] %s2191_s23  ;;  %s1826_s30 = sadd.s32 4294967294, %s2211_s28  }
  0x13   : > { %2720 = sst [smem:[#allocation9_spill]] %s2195_s24  ;;  %s38_s0 = sadd.s32 1, %s2203_s26 }
  0x14   : > { %2721 = sst [smem:[#allocation10_spill]] %s2199_s25  ;;  %p39_p0 = scmp.ge.s32.totalorder %s38_s0, 4 }
  0x15   : > { %2722 = sst [smem:[#allocation11_spill]] %s2203_s26  ;;  %s41_s17 = sadd.s32 1, %s2207_s27 }
  0x16   : > { %2723 = sst [smem:[#allocation12_spill]] %s2207_s27  ;;  %p464_p1 = scmp.ne.s32.totalorder %s2191_s23, %s2187_s22 }
  0x17   : > { %2724 = sst [smem:[#allocation13_spill]] %s2211_s28  ;;  %p465_p2 = scmp.eq.s32.totalorder %s1825_s29, 7 }
  0x18   : > { %s2771_s0 = smov (%p39_p0, %s38_s0), 0  ;;  %s2773_s17 = smov (!%p39_p0, %s41_s17), %s2207_s27 }
  0x19   : > { %2725 = sst [smem:[#allocation14_spill]] %s2771_s0  ;;  %p2365_p3 = por %p465_p2, %p464_p1 }
  0x1a   : > { %p470_p4 = scmp.ne.s32.totalorder %s2187_s22, %s2183_s21  ;;  %p43_p5 = scmp.ge.s32.totalorder %s2773_s17, 2 }
  0x1b   : > { %s2726_s18 = scalar_select %p2365_p3, 1, 0 }
  0x1c   : > { %p471_p6 = scmp.eq.s32.totalorder %s1826_s30, 7  ;;  %p1829_p7 = scmp.ge.s32.totalorder %s2211_s28, 1 }
  0x1d   : > { %2727 = sst [smem:[#allocation15_spill]] %s2726_s18  ;;  %p588_p8 = scmp.lt.s32.totalorder %s2211_s28, 9 }
  0x1e   : > { %s2775_s17 = smov (%p43_p5, %s2773_s17), 0  ;;  %p2375_p9 = por %p471_p6, %p470_p4 }
  0x1f   : > { %2728 = sst [smem:[#allocation16_spill]] %s2775_s17  ;;  %p589_p10 = pnand %p1829_p7, %p588_p8 }
  0x20   : > { %s2729_s19 = scalar_select %p2375_p9, 1, 0 }
  0x21   : > { %s451_s20 = ssub.s32 %s2207_s27, %s2775_s17  ;;  %s454_s29 = sadd.s32 1, %s2191_s23 }
  0x22   : > { %2730 = sst [smem:[#allocation17_spill]] %s2729_s19  ;;  %p452_p11 = scmp.eq.s32.totalorder %s451_s20, 0 }
  0x23   : > { %592 = sbr.rel (%p589_p10) target bundleno = 2976 (0xba0), region = 84  ;;  %p683_p12 = scmp.lt.s32.totalorder (!%p589_p10), %s2199_s25, 1 }
  0x24   : > { %s2383_s0 = scalar_select %p452_p11, %s2191_s23, %s454_s29  }
  0x25   : > { %p690_p13 = scmp.lt.s32.totalorder (!%p589_p10), %s2195_s24, 3  ;;  %s2733_s23 = sld [smem:[#allocation19_spill]] (!%p589_p10) }
  0x26   : > { %2731 = sst [smem:[#allocation18_spill]] %s2383_s0  ;;  %s2734_s4 = sld [smem:[#allocation23_spill]] (!%p589_p10) }
  0x27   : > { %s2735_s6 = sld [smem:[#allocation24_spill]] (!%p589_p10)  ;;  %s2737_s10 = sld [smem:[#allocation26_spill]] (!%p589_p10) }
  0x28   : > { %s2740_s14 = sand.u32 (!%p589_p10), 1, %s2187_s22  }
  0x29   : > { %s2458_s15 = scalar_lea.vmem (!%p589_p10), [#allocation4], %s2740_s14 }
  0x2a   : > { %s2389_s26 = scalar_select %p683_p12, %s2199_s25, 1 }
  0x2b   : > { %s2392_s19 = scalar_select %p690_p13, %s2195_s24, 3 }
  0x2c   : > { %s1830_s20 = sshll.u32 %s2389_s26, 3  ;;  %s2741_s24 = sld [smem:[#allocation9_spill]] }
  0x2d   : > { %s686_s21 = scalar_lea.vmem %s2733_s23, %s1830_s20  ;;  %s1877_s28 = sshll.u32 %s2392_s19, 4 }
  0x2e   : > { %s2406_s25 = scalar_lea.vmem %s2734_s4, %s1877_s28  ;;  %s2415_s30 = scalar_lea.vmem %s2735_s6, %s1877_s28 }
  0x2f   : > { %s2432_s3 = scalar_lea.vmem %s2737_s10, %s1877_s28  ;;  %s1880_s6 = sshll.u32 %s2392_s19, 5 }
  0x30   : > { %s727_s27 = scalar_lea.vmem %s2690_s13, %s2392_s19  ;;  %s2446_s20 = scalar_lea.vmem %s2689_s12, %s1880_s6 }
  0x31   : > { %s2738_s4 = sld [smem:[#allocation27_spill]]  ;;  %s2739_s10 = sld [smem:[#allocation28_spill]] }
  0x32   : > { %p1839_p0 = scmp.ne.s32.totalorder %s2741_s24, 0 }
  0x33   : > { %v739_v0 = vld [vmem:[%s686_s21] sm:$0xff] (!%p1839_p0)  ;;  %vm742_vm0 = vcmask (!%p1839_p0), 261120   ;;  %vm772_vm1 = vcmask (!%p1839_p0), 253952   ;;  %v2213_v7 = vmov (!%p1839_p0), 0.0   ;;  %s2743_s17 = sld [smem:[#allocation22_spill]] (!%p1839_p0) }
  0x34   : > { %738 = sbr.rel (%p1839_p0) target bundleno = 366 (0x16e), region = 88  ;;  %v743_v1 = vsel (!%p1839_p0), %vm742_vm0, %v739_v0, 0.0  ;;  %773 = vst.msk [vmem:[%s2458_s15] sm:$0x1] (!%p1839_p0), %vm772_vm1, %v2213_v7 }
  0x35   : > { %744 = vadd.xlane.f32.xlu0 (!%p1839_p0), %v743_v1 }
  0x37   : > { %s730_s1 = scalar_lea.vmem %s2738_s4, %s2392_s19  ;;  %s733_s9 = scalar_lea.vmem %s2739_s10, %s2392_s19 }
  0x38   : > { %s2742_s10 = sld [smem:[#allocation21_spill]] (!%p1839_p0) }
  0x39   : > { %v1841_v14 = vld [vmem:[%s2743_s17] ss:$0 sm:$0xff] (!%p1839_p0) }
  0x3e   : > { %v1840_v12 = vld [vmem:[%s2742_s10] ss:$0 sm:$0xff] }
  0xc2   : > { %v745_v2 = vpop.xlane.xlu0 %744 }
  0xc3   : > { %v747_v3 = vmul.f32 0.03125, %v745_v2 }
  0xc5   : > { %v748_v4 = vsub.f32 %v739_v0, %v747_v3 }
  0xc7   : > { %v749_v5 = vmul.f32 %v748_v4, %v748_v4 }
  0xc9   : > { %v750_v6 = vsel %vm742_vm0, %v749_v5, 0.0 }
  0xca   : > { %751 = vadd.xlane.f32.xlu0 %v750_v6 }
 0x157   : > { %v752_v8 = vpop.xlane.xlu0 %751 }
 0x158   : > { %v753_v9 = vmul.f32 0.03125, %v752_v8 }
 0x15a   : > { %v754_v10 = vadd.f32 1e-12, %v753_v9 }
 0x15c   : > { %2083 = vrsqrt.f32 %v754_v10 }
 0x166   : > { %v2084_v11 = vpop.eup %2083 }
 0x167   : > { %v756_v13 = vmul.f32 %v2084_v11, %v748_v4 }
 0x169   : > { %v763_v15 = vmul.f32 %v1840_v12, %v756_v13 }
 0x16b   : > { %v770_v16 = vadd.f32 %v1841_v14, %v763_v15 }
 0x16d   : > { %771 = vst.msk [vmem:[#allocation2] sm:$0xff] %vm742_vm0, %v770_v16 }
 0x16e PF: > { %v2085_v17 = vld [vmem:[%s2406_s25] sm:$0xff]   ;;  %v2214_v18 = vmov 0.0   ;;  %v2086_v19 = vld [vmem:[%s2406_s25 + $0x8] sm:$0xff]   ;;  %vm2215_vm2 = vmmov 0   ;;  %vm799_vm3 = vcmask 261120   ;;  %s2744_s23 = scalar_lea.vmem %s2682_s5, %s2392_s19  ;;  %s2216_s0 = smov 120  }
 0x16f   : > { %1911 = vmatprep.subr.bf16.mxu0 %v2214_v18  ;;  %1919 = vmatprep.subr.bf16.mxu1 %v2214_v18  ;;  %v1842_v22 = vld [vmem:[%s2744_s23] ss:$0 sm:$0xff]  ;;  %s2217_s16 = smov 96   ;;  %s2218_s18 = smov 80   ;;  %vm848_vm4 = vcmask 64512   ;;  %vm920_vm5 = vcmask 1043456  }
 0x170   : > { %1912 = vmatpush3.bf16.msra.mxu0 %v2085_v17  ;;  %1915 = vmatprep.mubr.msk.bf16.mxu0 %vm2215_vm2, %v2214_v18  ;;  %s2219_s28 = smov 88   ;;  %s2220_s2 = smov 72   ;;  %vm1081_vm6 = vcmask 130112   ;;  %vm1199_vm7 = vcmask 195712   ;;  %vm1317_vm8 = vcmask 261312   ;;  %vm1534_vm9 = vcmask 523264  }
 0x171   : > { %1913 = vmatprep.subr.bf16.mxu0 %v2214_v18  ;;  %1921 = vmatprep.mubr.msk.bf16.mxu1 %vm2215_vm2, %v2214_v18  ;;  %s2221_s14 = smov 112   ;;  %s2222_s4 = smov 104  }
 0x172   : > { %s2745_s21 = sld [smem:[#allocation20_spill]]  ;;  %s2224_s17 = smov 64  }
 0x173   : > { %s2225_s25 = smov 40   ;;  %s2226_s29 = smov 48  }
 0x174   : > { %v2477_v20 = vld [vmem:[#allocation2] sm:$0xff]  ;;  %1914 = vmatpush3.bf16.msra.mxu0 %v2086_v19  ;;  %s2227_s23 = smov 8  }
 0x175   : > { %v775_v21 = vpack.c.bf16 %v2477_v20, %v2477_v20  ;;  %1925 = vmatprep.subr.bf16.mxu0 %v2214_v18 }
 0x177   : > { %1916 = vmatmul.mubr.msk.bf16.vlgmr.msra.gmra.mrb[0].mxu0 %vm799_vm3, %v775_v21 }
 0x178   : > { %1927 = vmatprep.mubr.msk.bf16.mxu0 %vm2215_vm2, %v2214_v18  ;;  %s2746_s24 = scalar_lea.vmem %s2745_s21, %s2389_s26  ;;  %s2223_s26 = smov 56  }
 0x179   : > { %v1847_v41 = vld [vmem:[%s2746_s24] ss:$0 sm:$0xff]  ;;  %s2749_s21 = sld [smem:[#allocation25_spill]] }
 0x17f   : > { %s2750_s24 = scalar_lea.vmem %s2749_s21, %s2392_s19 }
 0x24a   : > { %v837_v23 = vpop.f32.mrb[0].mxu0 }
 0x24b   : > { %v838_v24 = vadd.f32 %v1842_v22, %v837_v23  ;;  %v1917_v25 = vpop.f32.mrb[1].mxu0 }
 0x24c   : > { %v840_v26 = vpop.f32.mrb[2].mxu0 }
 0x24d   : > { %v2493_v27 = vpack.c.bf16 %v838_v24, %v838_v24  ;;  %v1918_v28 = vpop.f32.mrb[3].mxu0 }
 0x24f   : > { %965 = vrot.lane.b32.xlu1 %v2493_v27, %s2216_s0  ;;  %846 = vrot.lane.b32.xlu0 %v2493_v27, %s2217_s16  ;;  %s2228_s0 = smov 16   ;;  %s2229_s16 = smov 24  }
 0x253   : > { %1085 = vrot.lane.b32.xlu1 %v2493_v27, %s2218_s18  ;;  %967 = vrot.lane.b32.xlu0 %v2493_v27, %s2219_s28  ;;  %s2747_s28 = scalar_lea.vmem %s2684_s7, %s2392_s19  ;;  %s2754_s18 = sld [smem:[#allocation9_spill]] }
 0x257   : > { %1203 = vrot.lane.b32.xlu1 %v2493_v27, %s2220_s2  ;;  %1083 = vrot.lane.b32.xlu0 %v2493_v27, %s2221_s14 }
 0x259   : > { %p1873_p1 = scmp.lt.s32.totalorder %s2754_s18, 0 }
 0x25a   : > { %vm1615_vm10 = vcmask (!%p1873_p1), 253952  }
 0x25b   : > { %1201 = vrot.lane.b32.xlu0 %v2493_v27, %s2222_s4  ;;  %s2748_s4 = scalar_lea.vmem %s2685_s8, %s2392_s19 }
 0x2c1   : > { %v847_v29 = vpop.permute.xlu0 %846  ;;  %v966_v32 = vpop.permute.xlu1 %965 }
 0x2c2   : > { %v853_v30 = vsel %vm848_vm4, %v847_v29, 0 }
 0x2c3   : > { %1920 = vmatpush3.bf16.xpose.msra.mxu1 %v853_v30 }
 0x2c4   : > { %1931 = vmatprep.subr.bf16.mxu1 %v2214_v18 }
 0x2c5   : > { %v968_v31 = vpop.permute.xlu0 %967  ;;  %v1086_v34 = vpop.permute.xlu1 %1085 }
 0x2c6   : > { %v973_v33 = vsel %vm848_vm4, %v968_v31, 0  ;;  %v1091_v35 = vsel %vm848_vm4, %v1086_v34, 0 }
 0x2c9   : > { %v1204_v36 = vpop.permute.xlu1 %1203  ;;  %v1084_v37 = vpop.permute.xlu0 %1083 }
 0x2ca   : > { %1922 = vmatmul.mubr.msk.bf16.vlgmr.msra.gmra.mrb[0].mxu1 %vm848_vm4, %v2493_v27  ;;  %v1209_v38 = vsel %vm848_vm4, %v1204_v36, 0 }
 0x2cb   : > { %1932 = vmatpush3.bf16.xpose.msra.mxu1 %v973_v33  ;;  %1933 = vmatprep.mubr.msk.bf16.mxu1 %vm2215_vm2, %v2214_v18 }
 0x2cc   : > { %1943 = vmatprep.subr.bf16.mxu1 %v2214_v18 }
 0x2cd   : > { %v1202_v39 = vpop.permute.xlu0 %1201 }
 0x2d2   : > { %1934 = vmatmul.mubr.msk.bf16.vlgmr.msra.gmra.mrb[4].mxu1 %vm848_vm4, %v966_v32 }
 0x2d3   : > { %1944 = vmatpush3.bf16.xpose.msra.mxu1 %v1091_v35  ;;  %1945 = vmatprep.mubr.msk.bf16.mxu1 %vm2215_vm2, %v2214_v18 }
 0x2d4   : > { %1955 = vmatprep.subr.bf16.mxu1 %v2214_v18 }
 0x2da   : > { %1946 = vmatmul.mubr.msk.bf16.vlgmr.msra.gmra.mrb[8].mxu1 %vm848_vm4, %v1084_v37 }
 0x2db   : > { %1956 = vmatpush3.bf16.xpose.msra.mxu1 %v1209_v38  ;;  %1957 = vmatprep.mubr.msk.bf16.mxu1 %vm2215_vm2, %v2214_v18 }
 0x2dc   : > { %1967 = vmatprep.subr.bf16.mxu1 %v2214_v18 }
 0x2e2   : > { %1958 = vmatmul.mubr.msk.bf16.vlgmr.msra.gmra.mrb[12].mxu1 %vm848_vm4, %v1202_v39 }
 0x2e3   : > { %1971 = vmatprep.mubr.msk.bf16.mxu1 %vm2215_vm2, %v2214_v18 }
 0x39d   : > { %v889_v40 = vpop.f32.mrb[0].mxu1 }
 0x39e   : > { %v895_v42 = vmul.f32 0.35355338, %v889_v40  ;;  %v1923_v43 = vpop.f32.mrb[1].mxu1 }
 0x39f   : > { %v892_v44 = vpop.f32.mrb[2].mxu1 }
 0x3a0   : > { %v1924_v45 = vpop.f32.mrb[3].mxu1  ;;  %v902_v46 = vadd.f32 %v1847_v41, %v895_v42 }
 0x3a2   : > { %v903_v47 = vsel %vm848_vm4, %v902_v46, -inf }
 0x3a3   : > { %904 = vmax.xlane.f32.xlu1 %v903_v47 }
 0x3a5   : > { %v1009_v48 = vpop.f32.mrb[4].mxu1 }
 0x3a6   : > { %v1015_v49 = vmul.f32 0.35355338, %v1009_v48  ;;  %v1935_v50 = vpop.f32.mrb[5].mxu1 }
 0x3a7   : > { %v1012_v51 = vpop.f32.mrb[6].mxu1 }
 0x3a8   : > { %v1936_v52 = vpop.f32.mrb[7].mxu1  ;;  %v1016_v53 = vadd.f32 %v1847_v41, %v1015_v49 }
 0x3aa   : > { %v1017_v54 = vsel %vm848_vm4, %v1016_v53, -inf }
 0x3ab   : > { %1018 = vmax.xlane.f32.xlu0 %v1017_v54 }
 0x3ad   : > { %v1127_v55 = vpop.f32.mrb[8].mxu1 }
 0x3ae   : > { %v1133_v56 = vmul.f32 0.35355338, %v1127_v55  ;;  %v1947_v57 = vpop.f32.mrb[9].mxu1 }
 0x3af   : > { %v1130_v58 = vpop.f32.mrb[10].mxu1 }
 0x3b0   : > { %v1948_v59 = vpop.f32.mrb[11].mxu1  ;;  %v1134_v60 = vadd.f32 %v1847_v41, %v1133_v56 }
 0x3b1   : > { %v2087_v59 = vld [vmem:[%s2415_s30] sm:$0xff]  }
 0x3b2   : > { %v1135_v61 = vsel %vm848_vm4, %v1134_v60, -inf  ;;  %1968 = vmatpush3.bf16.msra.mxu1 %v2087_v59 }
 0x3b3   : > { %1136 = vmax.xlane.f32.xlu0 %v1135_v61  ;;  %1969 = vmatprep.subr.bf16.mxu1 %v2214_v18 }
 0x3b5   : > { %v1245_v62 = vpop.f32.mrb[12].mxu1 }
 0x3b6   : > { %v1251_v63 = vmul.f32 0.35355338, %v1245_v62  ;;  %v1959_v0 = vpop.f32.mrb[13].mxu1 }
 0x3b7   : > { %v1248_v1 = vpop.f32.mrb[14].mxu1 }
 0x3b8   : > { %v1960_v2 = vpop.f32.mrb[15].mxu1  ;;  %v1252_v3 = vadd.f32 %v1847_v41, %v1251_v63 }
 0x3ba   : > { %v1253_v4 = vsel %vm848_vm4, %v1252_v3, -inf }
 0x3bb   : > { %1254 = vmax.xlane.f32.xlu1 %v1253_v4 }
 0x430   : > { %v905_v5 = vpop.xlane.xlu1 %904 }
 0x431   : > { %v906_v6 = vsub.f32 %v902_v46, %v905_v5 }
 0x433   : > { %v907_v7 = vmul.f32 1.442695, %v906_v6 }
 0x435   : > { %2095 = vpow2.f32 %v907_v7 }
 0x438   : > { %v1019_v8 = vpop.xlane.xlu0 %1018 }
 0x439   : > { %v1020_v9 = vsub.f32 %v1016_v53, %v1019_v8 }
 0x43b   : > { %v1021_v10 = vmul.f32 1.442695, %v1020_v9 }
 0x43d   : > { %2097 = vpow2.f32 %v1021_v10  ;;  %v1855_v10 = vld [vmem:[%s2747_s28] ss:$0 sm:$0xff] }
 0x43f   : > { %v2096_v11 = vpop.eup %2095 }
 0x440   : > { %v1137_v12 = vpop.xlane.xlu0 %1136  ;;  %v909_v13 = vsel %vm848_vm4, %v2096_v11, 0.0 }
 0x441   : > { %v1138_v14 = vsub.f32 %v1134_v60, %v1137_v12  ;;  %910 = vadd.xlane.f32.xlu0 %v909_v13  ;;  %v2088_v60 = vld [vmem:[%s2415_s30 + $0x8] sm:$0xff]  }
 0x442   : > { %1970 = vmatpush3.bf16.msra.mxu1 %v2088_v60 }
 0x443   : > { %v1139_v15 = vmul.f32 1.442695, %v1138_v14  ;;  %1983 = vmatprep.subr.bf16.mxu1 %v2214_v18 }
 0x445   : > { %2099 = vpow2.f32 %v1139_v15 }
 0x447   : > { %v2098_v16 = vpop.eup %2097 }
 0x448   : > { %v1023_v17 = vsel %vm848_vm4, %v2098_v16, 0.0  ;;  %v1255_v22 = vpop.xlane.xlu1 %1254 }
 0x449   : > { %1024 = vadd.xlane.f32.xlu1 %v1023_v17  ;;  %v1256_v23 = vsub.f32 %v1252_v3, %v1255_v22 }
 0x44b   : > { %v1257_v24 = vmul.f32 1.442695, %v1256_v23 }
 0x44d   : > { %2101 = vpow2.f32 %v1257_v24 }
 0x44f   : > { %v2100_v19 = vpop.eup %2099 }
 0x450   : > { %v1141_v21 = vsel %vm848_vm4, %v2100_v19, 0.0 }
 0x451   : > { %1142 = vadd.xlane.f32.xlu0 %v1141_v21 }
 0x457   : > { %v2102_v25 = vpop.eup %2101 }
 0x458   : > { %v1259_v26 = vsel %vm848_vm4, %v2102_v25, 0.0 }
 0x45a   : > { %1029 = vrot.lane.b32.xlu1 %v2493_v27, %s2223_s26 }
 0x467   : > { %915 = vrot.lane.b32.xlu0 %v2493_v27, %s2224_s17  ;;  %s2751_s17 = scalar_lea.vmem %s2688_s11, %s2392_s19 }
 0x46b   : > { %1265 = vrot.lane.b32.xlu0 %v2493_v27, %s2225_s25 }
 0x47e   : > { %1260 = vadd.xlane.f32.xlu1 %v1259_v26  ;;  %v2090_v26 = vld [vmem:[%s2432_s3 + $0x8] sm:$0xff]  }
 0x48f   : > { %1147 = vrot.lane.b32.xlu1 %v2493_v27, %s2226_s29 }
 0x4ce   : > { %v911_v28 = vpop.xlane.xlu0 %910 }
 0x4cf   : > { %2103 = vrcp.f32 %v911_v28 }
 0x4d6   : > { %v1025_v29 = vpop.xlane.xlu1 %1024 }
 0x4d7   : > { %2105 = vrcp.f32 %v1025_v29 }
 0x4d9   : > { %v2104_v30 = vpop.eup %2103 }
 0x4da   : > { %v913_v32 = vmul.f32 %v2104_v30, %v2096_v11  ;;  %v1030_v35 = vpop.permute.xlu1 %1029 }
 0x4db   : > { %v1035_v38 = vsel %vm920_vm5, %v1030_v35, 0 }
 0x4dc   : > { %v914_v36 = vpack.c.bf16 %v913_v32, %v913_v32 }
 0x4de   : > { %v1143_v31 = vpop.xlane.xlu0 %1142 }
 0x4df   : > { %2107 = vrcp.f32 %v1143_v31  ;;  %v1859_v31 = vld [vmem:[%s2748_s4] ss:$0 sm:$0xff] }
 0x4e1   : > { %v2106_v37 = vpop.eup %2105 }
 0x4e2   : > { %v916_v33 = vpop.permute.xlu0 %915  ;;  %v1027_v27 = vmul.f32 %v2106_v37, %v2098_v16  ;;  %v2091_v37 = vld [vmem:[%s2446_s20] sm:$0xff]  }
 0x4e3   : > { %v922_v34 = vsel %vm920_vm5, %v916_v33, 0  ;;  %v1860_v33 = vld [vmem:[%s2750_s24] ss:$0 sm:$0xff] }
 0x4e4   : > { %1926 = vmatpush3.bf16.msra.mxu0 %v922_v34  ;;  %v1028_v39 = vpack.c.bf16 %v1027_v27, %v1027_v27  ;;  %v2093_v27 = vld [vmem:[%s2446_s20 + $0x10] sm:$0xff]  }
 0x4e5   : > { %1937 = vmatprep.subr.bf16.mxu0 %v2214_v18 }
 0x4e6   : > { %v1266_v45 = vpop.permute.xlu0 %1265 }
 0x4e7   : > { %1928 = vmatmul.mubr.msk.bf16.vlgmr.msra.gmra.mrb[4].mxu0 %vm848_vm4, %v914_v36  ;;  %v1271_v47 = vsel %vm920_vm5, %v1266_v45, 0 }
 0x4e8   : > { %1938 = vmatpush3.bf16.msra.mxu0 %v1035_v38  ;;  %1939 = vmatprep.mubr.msk.bf16.mxu0 %vm2215_vm2, %v2214_v18  ;;  %v2092_v38 = vld [vmem:[%s2446_s20 + $0x8] sm:$0xff]  }
 0x4e9   : > { %1949 = vmatprep.subr.bf16.mxu0 %v2214_v18  ;;  %v2108_v40 = vpop.eup %2107 }
 0x4ea   : > { %v1145_v42 = vmul.f32 %v2108_v40, %v2100_v19  ;;  %v1861_v40 = vld [vmem:[%s2751_s17] ss:$0 sm:$0xff] }
 0x4ec   : > { %v1146_v46 = vpack.c.bf16 %v1145_v42, %v1145_v42 }
 0x4ef   : > { %1940 = vmatmul.mubr.msk.bf16.vlgmr.msra.gmra.mrb[8].mxu0 %vm848_vm4, %v1028_v39  ;;  %v2094_v39 = vld [vmem:[%s2446_s20 + $0x18] sm:$0xff]  }
 0x4f0   : > { %1951 = vmatprep.mubr.msk.bf16.mxu0 %vm2215_vm2, %v2214_v18 }
 0x50b   : > { %v1261_v41 = vpop.xlane.xlu1 %1260 }
 0x50c   : > { %2109 = vrcp.f32 %v1261_v41 }
 0x50f   : > { %v1148_v43 = vpop.permute.xlu1 %1147 }
 0x510   : > { %v1153_v44 = vsel %vm920_vm5, %v1148_v43, 0 }
 0x511   : > { %1950 = vmatpush3.bf16.msra.mxu0 %v1153_v44 }
 0x512   : > { %1961 = vmatprep.subr.bf16.mxu0 %v2214_v18 }
 0x514   : > { %1952 = vmatmul.mubr.msk.bf16.vlgmr.msra.gmra.mrb[12].mxu0 %vm848_vm4, %v1146_v46 }
 0x515   : > { %1962 = vmatpush3.bf16.msra.mxu0 %v1271_v47  ;;  %1963 = vmatprep.mubr.msk.bf16.mxu0 %vm2215_vm2, %v2214_v18 }
 0x516   : > { %v2110_v48 = vpop.eup %2109  ;;  %1975 = vmatprep.subr.bf16.mxu0 %v2214_v18 }
 0x517   : > { %v1263_v49 = vmul.f32 %v2110_v48, %v2102_v25  ;;  %v2089_v25 = vld [vmem:[%s2432_s3] sm:$0xff]  }
 0x519   : > { %v1264_v50 = vpack.c.bf16 %v1263_v49, %v1263_v49 }
 0x51c   : > { %1964 = vmatmul.mubr.msk.bf16.vlgmr.msra.gmra.mrb[16].mxu0 %vm848_vm4, %v1264_v50 }
 0x51d   : > { %1979 = vmatprep.mubr.msk.bf16.mxu0 %vm2215_vm2, %v2214_v18  ;;  %1976 = vmatpush3.bf16.msra.mxu0 %v2089_v25 }
 0x51e   : > { %1977 = vmatprep.subr.bf16.mxu0 %v2214_v18 }
 0x521   : > { %1978 = vmatpush3.bf16.msra.mxu0 %v2090_v26 }
 0x5ba   : > { %v958_v51 = vpop.f32.mrb[4].mxu0 }
 0x5bb   : > { %964 = vst.msk [vmem:[#allocation3] sm:$0xff] %vm848_vm4, %v958_v51  ;;  %v1929_v52 = vpop.f32.mrb[5].mxu0 }
 0x5bc   : > { %v961_v53 = vpop.f32.mrb[6].mxu0 }
 0x5bd   : > { %v1930_v54 = vpop.f32.mrb[7].mxu0 }
 0x5c2   : > { %v1071_v55 = vpop.f32.mrb[8].mxu0 }
 0x5c3   : > { %1078 = vrot.lane.b32.xlu1 %v1071_v55, %s2227_s23  ;;  %v1941_v56 = vpop.f32.mrb[9].mxu0  ;;  %v1865_v55 = vld [vmem:[%s727_s27] ss:$0 sm:$0xff] }
 0x5c4   : > { %v1074_v57 = vpop.f32.mrb[10].mxu0 }
 0x5c5   : > { %v1942_v58 = vpop.f32.mrb[11].mxu0 }
 0x5e7   : > { %v1189_v61 = vpop.f32.mrb[12].mxu0 }
 0x5e8   : > { %1196 = vrot.lane.b32.xlu0 %v1189_v61, %s2228_s0  ;;  %v1953_v62 = vpop.f32.mrb[13].mxu0 }
 0x5e9   : > { %v1192_v63 = vpop.f32.mrb[14].mxu0 }
 0x5ea   : > { %v1954_v0 = vpop.f32.mrb[15].mxu0 }
 0x5ef   : > { %v1307_v1 = vpop.f32.mrb[16].mxu0 }
 0x5f0   : > { %1314 = vrot.lane.b32.xlu1 %v1307_v1, %s2229_s16  ;;  %v1965_v2 = vpop.f32.mrb[17].mxu0 }
 0x5f1   : > { %v1310_v3 = vpop.f32.mrb[18].mxu0 }
 0x5f2   : > { %v1966_v4 = vpop.f32.mrb[19].mxu0 }
 0x635   : > { %v1079_v5 = vpop.permute.xlu1 %1078 }
 0x636   : > { %1082 = vst.msk [vmem:[#allocation3] sm:$0xff] %vm1081_vm6, %v1079_v5 }
 0x65a   : > { %v1197_v6 = vpop.permute.xlu0 %1196 }
 0x65b   : > { %1200 = vst.msk [vmem:[#allocation3] sm:$0xff] %vm1199_vm7, %v1197_v6 }
 0x662   : > { %v1315_v7 = vpop.permute.xlu1 %1314 }
 0x663   : > { %1318 = vst.msk [vmem:[#allocation3] sm:$0xff] %vm1317_vm8, %v1315_v7 }
 0x66a   : > { %v1319_v8 = vld [vmem:[#allocation3] sm:$0xff] }
 0x66b   : > { %v1320_v9 = vpack.c.bf16 %v1319_v8, %v1319_v8  ;;  %v1871_v8 = vld [vmem:[%s730_s1] ss:$0 sm:$0xff] }
 0x66d   : > { %1972 = vmatmul.mubr.msk.bf16.vlgmr.msra.gmra.mrb[16].mxu1 %vm799_vm3, %v1320_v9 }
 0x66e   : > { %1991 = vmatprep.mubr.msk.bf16.mxu1 %vm2215_vm2, %v2214_v18  ;;  %1984 = vmatpush3.bf16.msra.mxu1 %v2091_v37 }
 0x66f   : > { %1985 = vmatprep.subr.bf16.mxu1 %v2214_v18 }
 0x672   : > { %1986 = vmatpush3.bf16.msra.mxu1 %v2092_v38 }
 0x673   : > { %1987 = vmatprep.subr.bf16.mxu1 %v2214_v18 }
 0x676   : > { %1988 = vmatpush3.bf16.msra.mxu1 %v2093_v27 }
 0x677   : > { %1989 = vmatprep.subr.bf16.mxu1 %v2214_v18 }
 0x67a   : > { %1990 = vmatpush3.bf16.msra.mxu1 %v2094_v39 }
 0x740   : > { %v1381_v11 = vpop.f32.mrb[16].mxu1 }
 0x741   : > { %v1382_v12 = vadd.f32 %v1855_v10, %v1381_v11  ;;  %v1973_v13 = vpop.f32.mrb[17].mxu1  ;;  %v1872_v10 = vld [vmem:[%s733_s9] ss:$0 sm:$0xff] }
 0x742   : > { %v1384_v14 = vpop.f32.mrb[18].mxu1  ;;  %v1613_v13 = vld [vmem:[%s2458_s15] sm:$0x1] (!%p1873_p1) }
 0x743   : > { %v1974_v15 = vpop.f32.mrb[19].mxu1  ;;  %v1387_v16 = vadd.f32 %v1382_v12, %v2477_v20 }
 0x745   : > { %v1390_v17 = vsel %vm799_vm3, %v1387_v16, 0.0 }
 0x746   : > { %1391 = vadd.xlane.f32.xlu0 %v1390_v17 }
 0x7d3   : > { %v1392_v19 = vpop.xlane.xlu0 %1391 }
 0x7d4   : > { %v1394_v21 = vmul.f32 0.03125, %v1392_v19 }
 0x7d6   : > { %v1395_v22 = vsub.f32 %v1387_v16, %v1394_v21 }
 0x7d8   : > { %v1396_v23 = vmul.f32 %v1395_v22, %v1395_v22 }
 0x7da   : > { %v1397_v24 = vsel %vm799_vm3, %v1396_v23, 0.0 }
 0x7db   : > { %1398 = vadd.xlane.f32.xlu1 %v1397_v24 }
 0x868   : > { %v1399_v20 = vpop.xlane.xlu1 %1398 }
 0x869   : > { %v1400_v28 = vmul.f32 0.03125, %v1399_v20 }
 0x86b   : > { %v1401_v29 = vadd.f32 1e-12, %v1400_v28 }
 0x86d   : > { %2111 = vrsqrt.f32 %v1401_v29 }
 0x877   : > { %v2112_v30 = vpop.eup %2111 }
 0x878   : > { %v1403_v32 = vmul.f32 %v2112_v30, %v1395_v22 }
 0x87a   : > { %v1410_v34 = vmul.f32 %v1859_v31, %v1403_v32 }
 0x87c   : > { %v1417_v35 = vadd.f32 %v1860_v33, %v1410_v34 }
 0x87e   : > { %v1418_v36 = vpack.c.bf16 %v1417_v35, %v1417_v35 }
 0x880   : > { %1980 = vmatmul.mubr.msk.bf16.vlgmr.msra.gmra.mrb[20].mxu0 %vm799_vm3, %v1418_v36 }
 0x953   : > { %v1479_v41 = vpop.f32.mrb[20].mxu0 }
 0x954   : > { %v1480_v42 = vadd.f32 %v1861_v40, %v1479_v41  ;;  %v1981_v43 = vpop.f32.mrb[21].mxu0 }
 0x955   : > { %v1482_v44 = vpop.f32.mrb[22].mxu0 }
 0x956   : > { %v1486_v45 = vmul.f32 0.044715, %v1480_v42  ;;  %v1982_v46 = vpop.f32.mrb[23].mxu0  ;;  %v1485_v18 = vmul.f32 0.5, %v1480_v42 }
 0x958   : > { %v1487_v47 = vmul.f32 %v1486_v45, %v1480_v42 }
 0x95a   : > { %v1488_v48 = vmul.f32 %v1487_v47, %v1480_v42 }
 0x95c   : > { %v1489_v49 = vadd.f32 %v1488_v48, %v1480_v42 }
 0x95e   : > { %v1490_v50 = vmul.f32 0.7978846, %v1489_v49 }
 0x960   : > { %2113 = vtanh.f32 %v1490_v50 }
 0x96a   : > { %v2114_v51 = vpop.eup %2113 }
 0x96b   : > { %v1492_v52 = vadd.f32 1.0, %v2114_v51 }
 0x96d   : > { %v1493_v53 = vmul.f32 %v1492_v52, %v1485_v18 }
 0x96f   : > { %v1494_v54 = vpack.c.bf16 %v1493_v53, %v1493_v53 }
 0x971   : > { %1992 = vmatmul.mubr.msk.bf16.vlgmr.msra.gmra.mrb[20].mxu1 %vm1534_vm9, %v1494_v54 }
 0xa44   : > { %v1572_v56 = vpop.f32.mrb[20].mxu1 }
 0xa45   : > { %v1573_v57 = vadd.f32 %v1865_v55, %v1572_v56  ;;  %v1993_v58 = vpop.f32.mrb[21].mxu1 }
 0xa46   : > { %v1575_v59 = vpop.f32.mrb[22].mxu1 }
 0xa47   : > { %v1994_v60 = vpop.f32.mrb[23].mxu1  ;;  %v1578_v61 = vadd.f32 %v1573_v57, %v1417_v35 }
 0xa49   : > { %v1581_v62 = vsel %vm799_vm3, %v1578_v61, 0.0 }
 0xa4a   : > { %1582 = vadd.xlane.f32.xlu0 %v1581_v62 }
 0xad7   : > { %v1583_v63 = vpop.xlane.xlu0 %1582 }
 0xad8   : > { %v1584_v0 = vmul.f32 0.03125, %v1583_v63 }
 0xada   : > { %v1585_v1 = vsub.f32 %v1578_v61, %v1584_v0 }
 0xadc   : > { %v1586_v2 = vmul.f32 %v1585_v1, %v1585_v1 }
 0xade   : > { %v1587_v3 = vsel %vm799_vm3, %v1586_v2, 0.0 }
 0xadf   : > { %1588 = vadd.xlane.f32.xlu0 %v1587_v3 }
 0xb6c   : > { %v1589_v4 = vpop.xlane.xlu0 %1588 }
 0xb6d   : > { %v1590_v5 = vmul.f32 0.03125, %v1589_v4 }
 0xb6f   : > { %v1591_v6 = vadd.f32 1e-12, %v1590_v5 }
 0xb71   : > { %2115 = vrsqrt.f32 %v1591_v6 }
 0xb7b   : > { %v2116_v7 = vpop.eup %2115 }
 0xb7c   : > { %v1593_v9 = vmul.f32 %v2116_v7, %v1585_v1  ;;  %1612 = sbr.rel (%p1873_p1) target bundleno = 2949 (0xb85), region = 92 }
 0xb7e   : > { %v1600_v11 = vmul.f32 %v1871_v8, %v1593_v9 }
 0xb80   : > { %v1607_v12 = vadd.f32 %v1872_v10, %v1600_v11 }
 0xb82   : > { %1608 = vst.msk [vmem:[#allocation2] sm:$0xff] %vm799_vm3, %v1607_v12  ;;  %v1614_v14 = vadd.f32 (!%p1873_p1), %v1613_v13, %v1607_v12 }
 0xb84   : > { %1616 = vst.msk [vmem:[%s2458_s15] sm:$0x1] %vm1615_vm10, %v1614_v14 }
 0xb85 PF: > { %s2755_s1 = sld [smem:[#allocation10_spill]]  ;;  %s2757_s14 = sld [smem:[#allocation29_spill]] }
 0xb86   : > { %s1630_s6 = sshll.u32 %s2458_s15, 4  ;;  %s2758_s10 = sand.u32 1, %s2187_s22   ;;  %s1631_s6 = int_to_ptr.vmem [resolvable:$true] %s1630_s6 }
 0xb87   : > { %s1618_s21 = scalar_lea.sflag [#allocation5], %s2758_s10  ;;  %s2117_s24 = scalar_lea.vmem %s1631_s6, 16 }
 0xb88   : > { %p2118_p2 = scmp.ne.s32.totalorder %s1631_s6, %s2117_s24  ;;  %s2230_s3 = smov [#allocation4]  }
 0xb89   : > { %s2121_s26 = sshll.u32 %s2230_s3, 4  ;;  %s2122_s26 = int_to_ptr.vmem [resolvable:$false] %s2121_s26 }
 0xb8a   : > { %p2119_p4 = pnand %p2118_p2, %p2365_p3  ;;  %s2123_s17 = scalar_lea.vmem %s2122_s26, 32 }
 0xb8b   : > { %s1874_s19 = sshll.u32 %s2755_s1, 4  ;;  %p2124_p6 = scmp.lt.s32.totalorder %s1631_s6, %s2122_s26 }
 0xb8c   : > { %s2627_s4 = scalar_lea.hbm %s2757_s14, %s1874_s19  ;;  %p2120_p5 = pneg %p2119_p4 }
 0xb8d   : > { %p2125_p7 = scmp.lt.s32.totalorder %s2123_s17, %s2117_s24 }
 0xb8f   : > { %p2126_p8 = por %p2125_p7, %p2124_p6 }
 0xb91   : > { %p2127_p10 = pnand %p2126_p8, %p2120_p5 }
 0xb93   : > { %2130 = shalt.err (!%p2127_p10)
}
 0xb94   : > { %s2131_s15 = scalar_lea.hbm %s2627_s4, 16  ;;  %s2135_s27 = scalar_lea.hbm %s2757_s14, 32 }
 0xb95   : > { %p2132_p11 = scmp.ne.s32.totalorder %s2627_s4, %s2131_s15  ;;  %p2136_p0 = scmp.lt.u32.totalorder %s2627_s4, %s2757_s14 }
 0xb96   : > { %p2137_p1 = scmp.lt.u32.totalorder %s2135_s27, %s2131_s15  ;;  %p2139_p4 = scmp.lt.u32.totalorder %s2131_s15, %s2627_s4 }
 0xb97   : > { %p2133_p12 = pnand %p2132_p11, %p2365_p3 }
 0xb98   : > { %p2138_p2 = por %p2137_p1, %p2136_p0 }
 0xb99   : > { %p2134_p13 = pneg %p2133_p12 }
 0xb9a   : > { %p2140_p5 = por %p2139_p4, %p2138_p2 }
 0xb9c   : > { %p2141_p6 = pnand %p2140_p5, %p2134_p13 }
 0xb9e   : > { %2144 = shalt.err (!%p2141_p6)
}
 0xb9f   : > { %1995 = dma.vmem_to_hbm [thread:$0]  (%p2365_p3), %s1631_s6, 16, %s2627_s4, %s1618_s21  }
 0xba0 PF: > { %s2759_s0 = sld [smem:[#allocation13_spill]]  ;;  %s2760_s16 = sld [smem:[#allocation7_spill]] }
 0xba6   : > { %p2001_p7 = scmp.ge.s32.totalorder %s2759_s0, 2  ;;  %s1642_s18 = sand.u32 1, %s2760_s16  }
 0xba7   : > { %s1643_s1 = scalar_lea.sflag [#allocation5], %s1642_s18 }
 0xba8   : > { %p1998_p8 = pnand %p2001_p7, %p2375_p9 }
 0xbaa   : > { %2178 = dma.done.wait (!%p1998_p8), %s1643_s1, 16  }
 0xbab   : > { %2180 = vsyncadd (!%p1998_p8), %s1643_s1, 4294967280  ;;  %s29_s28 = sadd.s32 1, %s2759_s0   ;;  %s2762_s19 = sld [smem:[#allocation8_spill]] }
 0xbac   : > { %p26_p10 = scmp.ge.s32.totalorder %s29_s28, 10   ;;  %s2763_s23 = sld [smem:[#allocation18_spill]] }
 0xbad   : > { %s2764_s24 = sld [smem:[#allocation11_spill]]  ;;  %s2765_s25 = sld [smem:[#allocation12_spill]] }
 0xbae   : > { %s2766_s26 = sld [smem:[#allocation14_spill]]  ;;  %s2767_s27 = sld [smem:[#allocation16_spill]] }
 0xbaf   : > { %s2768_s21 = smov %s2187_s22  ;;  %28 = sbr.rel (!%p26_p10) target bundleno = 17 (0x11), region = 166 }
 0xbb1   : > { %s2769_s22 = smov %s2762_s19 }
 0xbb6   :  { %1647 = vsyncpa [#allocation5], 1 }
 0xbb7   :  { %1649 = vsyncpa [#allocation5 + $0x1], 1 }

</bundles_post_ra>
